<compile_context>
chip_gen: v6e
topology: v6e:2x2x1
jax: 0.10.0
libtpu: 0.0.40
codegen_flags: <defaults>
</compile_context>

<pallas_src>
import functools

import jax
import jax.numpy as jnp
from jax.experimental import pallas as pl
from jax.experimental.pallas import tpu as pltpu

# ----- small synthetic BERT config -----
B, S = 4, 16                 # batch, sequence length  (M = B*S = 64 rows)
H, NH, HD = 128, 2, 64       # hidden, num heads, head dim
I = 256                      # FFN intermediate size
L = 2                        # number of encoder layers
VOCAB = 64
MAX_POS = 32
EPS = 1e-12
PACKW = max(3 * H, I)        # lane width of the packed per-layer vector block

# packed-vector row indices
_BQKV, _BO, _B1, _B2, _LN1G, _LN1B, _LN2G, _LN2B = range(8)


# --------------------------- in-kernel helpers --------------------------------

def _ln(x, g, b):
    """LayerNorm over the lane (hidden) axis, f32."""
    mu = jnp.mean(x, axis=-1, keepdims=True)
    xc = x - mu
    var = jnp.mean(xc * xc, axis=-1, keepdims=True)
    return xc * jax.lax.rsqrt(var + EPS) * g + b


def _gelu(x):
    # TODO(synk): HF BERT uses exact erf GELU; tanh approximation differs ~1e-3.
    c = 0.7978845608028654
    return 0.5 * x * (1.0 + jnp.tanh(c * (x + 0.044715 * x * x * x)))


# --------------------------- fused encoder kernel ------------------------------

def _encoder_kernel(x_ref, mask_ref, wqkv_ref, wo_ref, w1_ref, w2_ref, vec_ref,
                    h_ref, ctx_ref, *, batch, seq, nheads, head_dim, inter):
    """One grid step = (batch tile, encoder layer).

    The output block index depends only on the batch tile, so h_ref stays
    resident in VMEM across the inner ("arbitrary") layer axis and acts as the
    residual stream; HBM writeback happens once per batch tile.
    """
    hidden = nheads * head_dim
    rows = batch * seq
    scale = 1.0 / (head_dim ** 0.5)

    # First layer of this batch tile: seed the residual stream with the
    # (already embedding-LayerNormed) input.
    @pl.when(pl.program_id(1) == 0)
    def _():
        h_ref[...] = x_ref[...]

    x = h_ref[...]                                     # (rows, H) f32 residual
    xb = x.astype(jnp.bfloat16)

    vec = vec_ref[...]                                 # (8, PACKW) f32, 1 DMA
    bqkv = vec[_BQKV:_BQKV + 1, :3 * hidden]
    bo = vec[_BO:_BO + 1, :hidden]
    b1 = vec[_B1:_B1 + 1, :inter]
    b2 = vec[_B2:_B2 + 1, :hidden]
    ln1_g = vec[_LN1G:_LN1G + 1, :hidden]
    ln1_b = vec[_LN1B:_LN1B + 1, :hidden]
    ln2_g = vec[_LN2G:_LN2G + 1, :hidden]
    ln2_b = vec[_LN2B:_LN2B + 1, :hidden]

    # ---- fused QKV projection: one (M,H)x(H,3H) matmul, f32 accumulation ----
    qkv = jnp.dot(xb, wqkv_ref[...], preferred_element_type=jnp.float32) + bqkv
    qkvb = qkv.astype(jnp.bfloat16)
    q3 = qkvb[:, 0 * hidden:1 * hidden].reshape(batch, seq, hidden)
    k3 = qkvb[:, 1 * hidden:2 * hidden].reshape(batch, seq, hidden)
    v3 = qkvb[:, 2 * hidden:3 * hidden].reshape(batch, seq, hidden)

    mask = mask_ref[...]                               # (batch, 1, seq) additive

    # ---- attention: batched over the batch axis with 3-D einsums; per-head
    #      PV result written straight into the bf16 VMEM ctx scratch ----
    for h in range(nheads):
        c = slice(h * head_dim, (h + 1) * head_dim)
        qh, kh, vh = q3[:, :, c], k3[:, :, c], v3[:, :, c]     # (batch, seq, HD)
        s = jnp.einsum('bqd,bkd->bqk', qh, kh,
                       preferred_element_type=jnp.float32) * scale + mask
        s = s - jnp.max(s, axis=-1, keepdims=True)
        p = jnp.exp(s)
        p = p / jnp.sum(p, axis=-1, keepdims=True)             # exact softmax
        ctx_h = jnp.einsum('bqk,bkd->bqd', p.astype(jnp.bfloat16), vh,
                           preferred_element_type=jnp.float32)
        ctx_ref[:, c] = ctx_h.reshape(rows, head_dim).astype(jnp.bfloat16)

    # ---- output projection + residual + LayerNorm (fused epilogue) ----
    attn_out = jnp.dot(ctx_ref[...], wo_ref[...],
                       preferred_element_type=jnp.float32) + bo
    x1 = _ln(x + attn_out, ln1_g, ln1_b)

    # ---- FFN (GELU) + residual + LayerNorm (fused epilogue) ----
    h1 = jnp.dot(x1.astype(jnp.bfloat16), w1_ref[...],
                 preferred_element_type=jnp.float32) + b1
    h1 = _gelu(h1)
    ffn = jnp.dot(h1.astype(jnp.bfloat16), w2_ref[...],
                  preferred_element_type=jnp.float32) + b2
    h_ref[...] = _ln(x1 + ffn, ln2_g, ln2_b)


# --------------------------- parameter init -----------------------------------

def init_params(key):
    def nrm(k, shape):
        return 0.02 * jax.random.normal(k, shape, dtype=jnp.float32)

    keys = iter(jax.random.split(key, 3 + 6 * L))
    params = {
        "word_emb": nrm(next(keys), (VOCAB, H)),
        "pos_emb": nrm(next(keys), (MAX_POS, H)),
        "tok_emb": nrm(next(keys), (2, H)),
        "emb_ln_g": jnp.ones((H,), jnp.float32),
        "emb_ln_b": jnp.zeros((H,), jnp.float32),
    }
    wqkv, wo, w1, w2 = [], [], [], []
    for _ in range(L):
        wq = nrm(next(keys), (H, H))
        wk = nrm(next(keys), (H, H))
        wv = nrm(next(keys), (H, H))
        wqkv.append(jnp.concatenate([wq, wk, wv], axis=1))      # (H, 3H) fused QKV
        wo.append(nrm(next(keys), (H, H)))
        w1.append(nrm(next(keys), (H, I)))
        w2.append(nrm(next(keys), (I, H)))

    # Eight per-layer vectors packed into one (L, 8, PACKW) slab: 1 DMA/layer.
    vec = jnp.zeros((8, PACKW), jnp.float32)
    vec = vec.at[_LN1G, :H].set(1.0).at[_LN2G, :H].set(1.0)     # LN gammas = 1

    # Matmul weights stored bf16 (MXU-native, half the DMA bytes); packed
    # biases / LayerNorm params stay f32. Leading axis = layer.
    params["stacked"] = {
        "wqkv": jnp.stack(wqkv).astype(jnp.bfloat16),           # (L, H, 3H)
        "wo": jnp.stack(wo).astype(jnp.bfloat16),               # (L, H, H)
        "w1": jnp.stack(w1).astype(jnp.bfloat16),               # (L, H, I)
        "w2": jnp.stack(w2).astype(jnp.bfloat16),               # (L, I, H)
        "vec": jnp.tile(vec[None], (L, 1, 1)),                  # (L, 8, PACKW)
    }
    return params


# --------------------------- forward pass --------------------------------------

def bert_encoder(params, input_ids, attention_mask=None, *, batch_tiles=1):
    b, s = input_ids.shape
    m = b * s
    assert H == NH * HD
    assert b % batch_tiles == 0
    b_pt = b // batch_tiles            # batch elements per grid tile
    rows_pt = b_pt * s                 # rows per grid tile
    if attention_mask is None:
        attention_mask = jnp.ones((b, s), dtype=jnp.float32)

    # HF BERT extended attention mask: (1 - mask) * large negative, added to scores.
    mask_add = ((1.0 - attention_mask.astype(jnp.float32)) * -1e9)[:, None, :]  # (B,1,S)

    # Embeddings + embedding LayerNorm (cheap XLA glue, done once outside the kernel).
    x = (jnp.take(params["word_emb"], input_ids, axis=0)
         + params["pos_emb"][:s][None, :, :]
         + params["tok_emb"][0][None, None, :])
    mu = jnp.mean(x, axis=-1, keepdims=True)
    var = jnp.mean((x - mu) ** 2, axis=-1, keepdims=True)
    x = (x - mu) * jax.lax.rsqrt(var + EPS) * params["emb_ln_g"] + params["emb_ln_b"]
    x = x.reshape(m, H).astype(jnp.float32)

    stk = params["stacked"]

    def per_tile2(shape):
        # 2-D block selected by the batch-tile index, constant across layers.
        return pl.BlockSpec(shape, lambda bt, l: (bt, 0))

    def per_tile3(shape):
        return pl.BlockSpec(shape, lambda bt, l: (bt, 0, 0))

    def per_layer(shape):
        # Leading layer axis selected by the inner grid index and squeezed away.
        return pl.BlockSpec((None,) + shape, lambda bt, l: (l,) + (0,) * len(shape))

    kernel = functools.partial(_encoder_kernel, batch=b_pt, seq=s,
                               nheads=NH, head_dim=HD, inter=I)

    hidden = pl.pallas_call(
        kernel,
        out_shape=jax.ShapeDtypeStruct((m, H), jnp.float32),
        grid=(batch_tiles, L),
        in_specs=[
            per_tile2((rows_pt, H)),          # embedded + LN'd input
            per_tile3((b_pt, 1, s)),          # additive attention mask
            per_layer((H, 3 * H)),            # wqkv (bf16)
            per_layer((H, H)),                # wo   (bf16)
            per_layer((H, I)),                # w1   (bf16)
            per_layer((I, H)),                # w2   (bf16)
            per_layer((8, PACKW)),            # packed biases + LN params (f32)
        ],
        out_specs=per_tile2((rows_pt, H)),    # VMEM-resident residual stream
        scratch_shapes=[pltpu.VMEM((rows_pt, H), jnp.bfloat16)],  # attention ctx
        compiler_params=pltpu.CompilerParams(
            # batch tiles are independent (v7x megacore); layers are sequential.
            dimension_semantics=("parallel", "arbitrary")),
    )(x, mask_add, stk["wqkv"], stk["wo"], stk["w1"], stk["w2"], stk["vec"])

    return hidden.reshape(b, s, H)[:, 0, :]   # CLS token output, (B, H)


# ------------------------------- main -------------------------------------------

if __name__ == "__main__":
    key = jax.random.PRNGKey(0)
    k_param, k_ids = jax.random.split(key)
    params = init_params(k_param)

    input_ids = jax.random.randint(k_ids, (B, S), 0, VOCAB, dtype=jnp.int32)
    attention_mask = jnp.ones((B, S), dtype=jnp.float32)

    cls_out = jax.jit(bert_encoder)(params, input_ids, attention_mask)
    jax.block_until_ready(cls_out)
    assert cls_out.shape == (B, H)
    assert bool(jnp.all(jnp.isfinite(cls_out)))
    print("KERNEL_OK")
</pallas_src>

<mosaic_0001>
module attributes {stable_mosaic.version = 11 : i64} {
  func.func @_encoder_kernel(%arg0: i32, %arg1: i32, %arg2: memref<64x128xf32, #tpu.memory_space<vmem>>, %arg3: memref<4x1x16xf32, #tpu.memory_space<vmem>>, %arg4: memref<1x128x384xbf16, #tpu.memory_space<vmem>>, %arg5: memref<1x128x128xbf16, #tpu.memory_space<vmem>>, %arg6: memref<1x128x256xbf16, #tpu.memory_space<vmem>>, %arg7: memref<1x256x128xbf16, #tpu.memory_space<vmem>>, %arg8: memref<1x8x384xf32, #tpu.memory_space<vmem>>, %arg9: memref<64x128xf32, #tpu.memory_space<vmem>>, %arg10: memref<64x128xbf16, #tpu.memory_space<vmem>>) attributes {dimension_semantics = [#tpu.dimension_semantics<parallel>, #tpu.dimension_semantics<arbitrary>], iteration_bounds = array<i64: 1, 2>, scalar_prefetch = 0 : i64, scratch_operands = 1 : i64, tpu.core_type = #tpu.core_type<tc>, window_params = [{transform_indices = @transform_0, window_bounds = array<i64: 64, 128>}, {transform_indices = @transform_1, window_bounds = array<i64: 4, 1, 16>}, {transform_indices = @transform_2, window_bounds = array<i64: 1, 128, 384>}, {transform_indices = @transform_3, window_bounds = array<i64: 1, 128, 128>}, {transform_indices = @transform_4, window_bounds = array<i64: 1, 128, 256>}, {transform_indices = @transform_5, window_bounds = array<i64: 1, 256, 128>}, {transform_indices = @transform_6, window_bounds = array<i64: 1, 8, 384>}, {transform_indices = @transform_7, window_bounds = array<i64: 64, 128>}]} {
    %c0_i32 = arith.constant 0 : i32
    %0 = arith.cmpi eq, %arg1, %c0_i32 : i32
    %1 = arith.extui %0 : i1 to i32
    %c0_i32_0 = arith.constant 0 : i32
    %2 = arith.cmpi ne, %1, %c0_i32_0 : i32
    scf.if %2 {
      %c0_54 = arith.constant 0 : index
      %c0_55 = arith.constant 0 : index
      %146 = vector.load %arg2[%c0_54, %c0_55] : memref<64x128xf32, #tpu.memory_space<vmem>>, vector<64x128xf32>
      %c0_56 = arith.constant 0 : index
      %c0_57 = arith.constant 0 : index
      %147 = vector.load %arg9[%c0_56, %c0_57] : memref<64x128xf32, #tpu.memory_space<vmem>>, vector<64x128xf32>
      tpu.vector_store %arg9[%c0_56, %c0_57], %146 {strides = array<i32>} : memref<64x128xf32, #tpu.memory_space<vmem>>, vector<64x128xf32>,
    } else {
    }
    %c0 = arith.constant 0 : index
    %c0_1 = arith.constant 0 : index
    %3 = vector.load %arg9[%c0, %c0_1] : memref<64x128xf32, #tpu.memory_space<vmem>>, vector<64x128xf32>
    %4 = arith.truncf %3 : vector<64x128xf32> to vector<64x128xbf16>
    %c0_2 = arith.constant 0 : index
    %c0_3 = arith.constant 0 : index
    %c0_4 = arith.constant 0 : index
    %5 = vector.load %arg8[%c0_2, %c0_3, %c0_4] : memref<1x8x384xf32, #tpu.memory_space<vmem>>, vector<1x8x384xf32>
    %6 = vector.shape_cast %5 : vector<1x8x384xf32> to vector<8x384xf32>
    %7 = vector.extract_strided_slice %6 {offsets = [0, 0], sizes = [1, 384], strides = [1, 1]} : vector<8x384xf32> to vector<1x384xf32>
    %8 = vector.extract_strided_slice %6 {offsets = [1, 0], sizes = [1, 128], strides = [1, 1]} : vector<8x384xf32> to vector<1x128xf32>
    %9 = vector.extract_strided_slice %6 {offsets = [2, 0], sizes = [1, 256], strides = [1, 1]} : vector<8x384xf32> to vector<1x256xf32>
    %10 = vector.extract_strided_slice %6 {offsets = [3, 0], sizes = [1, 128], strides = [1, 1]} : vector<8x384xf32> to vector<1x128xf32>
    %11 = vector.extract_strided_slice %6 {offsets = [4, 0], sizes = [1, 128], strides = [1, 1]} : vector<8x384xf32> to vector<1x128xf32>
    %12 = vector.extract_strided_slice %6 {offsets = [5, 0], sizes = [1, 128], strides = [1, 1]} : vector<8x384xf32> to vector<1x128xf32>
    %13 = vector.extract_strided_slice %6 {offsets = [6, 0], sizes = [1, 128], strides = [1, 1]} : vector<8x384xf32> to vector<1x128xf32>
    %14 = vector.extract_strided_slice %6 {offsets = [7, 0], sizes = [1, 128], strides = [1, 1]} : vector<8x384xf32> to vector<1x128xf32>
    %c0_5 = arith.constant 0 : index
    %c0_6 = arith.constant 0 : index
    %c0_7 = arith.constant 0 : index
    %15 = vector.load %arg4[%c0_5, %c0_6, %c0_7] : memref<1x128x384xbf16, #tpu.memory_space<vmem>>, vector<1x128x384xbf16>
    %16 = vector.shape_cast %15 : vector<1x128x384xbf16> to vector<128x384xbf16>
    %cst = arith.constant dense<0.000000e+00> : vector<64x384xf32>
    %17 = tpu.matmul %4, %16, %cst {dimension_numbers = #tpu.dot_dimension_numbers<[1], [0], [0], [1], [0, 0, 1, 1], [], []>} : vector<64x128xbf16>, vector<128x384xbf16>, vector<64x384xf32> -> vector<64x384xf32>
    %18 = vector.broadcast %7 : vector<1x384xf32> to vector<64x384xf32>
    %19 = arith.addf %17, %18 : vector<64x384xf32>
    %20 = arith.truncf %19 : vector<64x384xf32> to vector<64x384xbf16>
    %21 = vector.extract_strided_slice %20 {offsets = [0, 0], sizes = [64, 128], strides = [1, 1]} : vector<64x384xbf16> to vector<64x128xbf16>
    %22 = vector.shape_cast %21 : vector<64x128xbf16> to vector<4x16x128xbf16>
    %23 = vector.extract_strided_slice %20 {offsets = [0, 128], sizes = [64, 128], strides = [1, 1]} : vector<64x384xbf16> to vector<64x128xbf16>
    %24 = vector.shape_cast %23 : vector<64x128xbf16> to vector<4x16x128xbf16>
    %25 = vector.extract_strided_slice %20 {offsets = [0, 256], sizes = [64, 128], strides = [1, 1]} : vector<64x384xbf16> to vector<64x128xbf16>
    %26 = vector.shape_cast %25 : vector<64x128xbf16> to vector<4x16x128xbf16>
    %c0_8 = arith.constant 0 : index
    %c0_9 = arith.constant 0 : index
    %c0_10 = arith.constant 0 : index
    %27 = vector.load %arg3[%c0_8, %c0_9, %c0_10] : memref<4x1x16xf32, #tpu.memory_space<vmem>>, vector<4x1x16xf32>
    %28 = vector.extract_strided_slice %22 {offsets = [0, 0, 0], sizes = [4, 16, 64], strides = [1, 1, 1]} : vector<4x16x128xbf16> to vector<4x16x64xbf16>
    %29 = vector.extract_strided_slice %24 {offsets = [0, 0, 0], sizes = [4, 16, 64], strides = [1, 1, 1]} : vector<4x16x128xbf16> to vector<4x16x64xbf16>
    %30 = vector.extract_strided_slice %26 {offsets = [0, 0, 0], sizes = [4, 16, 64], strides = [1, 1, 1]} : vector<4x16x128xbf16> to vector<4x16x64xbf16>
    "tpu.trace_start"() <{level = 10 : i32, message = "bqd,bkd->bqk"}> : () -> ()
    %cst_11 = arith.constant dense<0.000000e+00> : vector<4x16x16xf32>
    %31 = tpu.matmul %28, %29, %cst_11 {dimension_numbers = #tpu.dot_dimension_numbers<[2], [2], [1], [1], [0, 0, 0, 1, 1, 1], [0], [0]>} : vector<4x16x64xbf16>, vector<4x16x64xbf16>, vector<4x16x16xf32> -> vector<4x16x16xf32>
    "tpu.trace_stop"() : () -> ()
    %cst_12 = arith.constant 1.250000e-01 : f32
    %32 = vector.broadcast %cst_12 : f32 to vector<4x16x16xf32>
    %33 = arith.mulf %31, %32 : vector<4x16x16xf32>
    %34 = vector.broadcast %27 : vector<4x1x16xf32> to vector<4x16x16xf32>
    %35 = arith.addf %33, %34 : vector<4x16x16xf32>
    %cst_13 = arith.constant dense<0xFF800000> : vector<4x16xf32>
    %36 = vector.multi_reduction <maximumf>, %35, %cst_13 [2] : vector<4x16x16xf32> to vector<4x16xf32>
    %37 = vector.shape_cast %36 : vector<4x16xf32> to vector<4x16x1xf32>
    %38 = vector.broadcast %37 : vector<4x16x1xf32> to vector<4x16x16xf32>
    %39 = arith.subf %35, %38 : vector<4x16x16xf32>
    %40 = math.exp %39 : vector<4x16x16xf32>
    %cst_14 = arith.constant dense<0.000000e+00> : vector<4x16xf32>
    %41 = vector.multi_reduction <add>, %40, %cst_14 [2] : vector<4x16x16xf32> to vector<4x16xf32>
    %42 = vector.shape_cast %41 : vector<4x16xf32> to vector<4x16x1xf32>
    %43 = vector.broadcast %42 : vector<4x16x1xf32> to vector<4x16x16xf32>
    %44 = arith.divf %40, %43 : vector<4x16x16xf32>
    %45 = arith.truncf %44 : vector<4x16x16xf32> to vector<4x16x16xbf16>
    "tpu.trace_start"() <{level = 10 : i32, message = "bqk,bkd->bqd"}> : () -> ()
    %cst_15 = arith.constant dense<0.000000e+00> : vector<4x16x64xf32>
    %46 = tpu.matmul %45, %30, %cst_15 {dimension_numbers = #tpu.dot_dimension_numbers<[2], [1], [1], [2], [0, 0, 0, 1, 1, 2], [0], [0]>} : vector<4x16x16xbf16>, vector<4x16x64xbf16>, vector<4x16x64xf32> -> vector<4x16x64xf32>
    "tpu.trace_stop"() : () -> ()
    %47 = vector.shape_cast %46 : vector<4x16x64xf32> to vector<64x64xf32>
    %48 = arith.truncf %47 : vector<64x64xf32> to vector<64x64xbf16>
    %c0_16 = arith.constant 0 : index
    %c0_17 = arith.constant 0 : index
    %49 = vector.load %arg10[%c0_16, %c0_17] : memref<64x128xbf16, #tpu.memory_space<vmem>>, vector<64x64xbf16>
    tpu.vector_store %arg10[%c0_16, %c0_17], %48 {strides = array<i32>} : memref<64x128xbf16, #tpu.memory_space<vmem>>, vector<64x64xbf16>,
    %50 = vector.extract_strided_slice %22 {offsets = [0, 0, 64], sizes = [4, 16, 64], strides = [1, 1, 1]} : vector<4x16x128xbf16> to vector<4x16x64xbf16>
    %51 = vector.extract_strided_slice %24 {offsets = [0, 0, 64], sizes = [4, 16, 64], strides = [1, 1, 1]} : vector<4x16x128xbf16> to vector<4x16x64xbf16>
    %52 = vector.extract_strided_slice %26 {offsets = [0, 0, 64], sizes = [4, 16, 64], strides = [1, 1, 1]} : vector<4x16x128xbf16> to vector<4x16x64xbf16>
    "tpu.trace_start"() <{level = 10 : i32, message = "bqd,bkd->bqk"}> : () -> ()
    %cst_18 = arith.constant dense<0.000000e+00> : vector<4x16x16xf32>
    %53 = tpu.matmul %50, %51, %cst_18 {dimension_numbers = #tpu.dot_dimension_numbers<[2], [2], [1], [1], [0, 0, 0, 1, 1, 1], [0], [0]>} : vector<4x16x64xbf16>, vector<4x16x64xbf16>, vector<4x16x16xf32> -> vector<4x16x16xf32>
    "tpu.trace_stop"() : () -> ()
    %cst_19 = arith.constant 1.250000e-01 : f32
    %54 = vector.broadcast %cst_19 : f32 to vector<4x16x16xf32>
    %55 = arith.mulf %53, %54 : vector<4x16x16xf32>
    %56 = vector.broadcast %27 : vector<4x1x16xf32> to vector<4x16x16xf32>
    %57 = arith.addf %55, %56 : vector<4x16x16xf32>
    %cst_20 = arith.constant dense<0xFF800000> : vector<4x16xf32>
    %58 = vector.multi_reduction <maximumf>, %57, %cst_20 [2] : vector<4x16x16xf32> to vector<4x16xf32>
    %59 = vector.shape_cast %58 : vector<4x16xf32> to vector<4x16x1xf32>
    %60 = vector.broadcast %59 : vector<4x16x1xf32> to vector<4x16x16xf32>
    %61 = arith.subf %57, %60 : vector<4x16x16xf32>
    %62 = math.exp %61 : vector<4x16x16xf32>
    %cst_21 = arith.constant dense<0.000000e+00> : vector<4x16xf32>
    %63 = vector.multi_reduction <add>, %62, %cst_21 [2] : vector<4x16x16xf32> to vector<4x16xf32>
    %64 = vector.shape_cast %63 : vector<4x16xf32> to vector<4x16x1xf32>
    %65 = vector.broadcast %64 : vector<4x16x1xf32> to vector<4x16x16xf32>
    %66 = arith.divf %62, %65 : vector<4x16x16xf32>
    %67 = arith.truncf %66 : vector<4x16x16xf32> to vector<4x16x16xbf16>
    "tpu.trace_start"() <{level = 10 : i32, message = "bqk,bkd->bqd"}> : () -> ()
    %cst_22 = arith.constant dense<0.000000e+00> : vector<4x16x64xf32>
    %68 = tpu.matmul %67, %52, %cst_22 {dimension_numbers = #tpu.dot_dimension_numbers<[2], [1], [1], [2], [0, 0, 0, 1, 1, 2], [0], [0]>} : vector<4x16x16xbf16>, vector<4x16x64xbf16>, vector<4x16x64xf32> -> vector<4x16x64xf32>
    "tpu.trace_stop"() : () -> ()
    %69 = vector.shape_cast %68 : vector<4x16x64xf32> to vector<64x64xf32>
    %70 = arith.truncf %69 : vector<64x64xf32> to vector<64x64xbf16>
    %c0_23 = arith.constant 0 : index
    %c64 = arith.constant 64 : index
    %71 = vector.load %arg10[%c0_23, %c64] : memref<64x128xbf16, #tpu.memory_space<vmem>>, vector<64x64xbf16>
    tpu.vector_store %arg10[%c0_23, %c64], %70 {strides = array<i32>} : memref<64x128xbf16, #tpu.memory_space<vmem>>, vector<64x64xbf16>,
    %c0_24 = arith.constant 0 : index
    %c0_25 = arith.constant 0 : index
    %72 = vector.load %arg10[%c0_24, %c0_25] : memref<64x128xbf16, #tpu.memory_space<vmem>>, vector<64x128xbf16>
    %c0_26 = arith.constant 0 : index
    %c0_27 = arith.constant 0 : index
    %c0_28 = arith.constant 0 : index
    %73 = vector.load %arg5[%c0_26, %c0_27, %c0_28] : memref<1x128x128xbf16, #tpu.memory_space<vmem>>, vector<1x128x128xbf16>
    %74 = vector.shape_cast %73 : vector<1x128x128xbf16> to vector<128x128xbf16>
    %cst_29 = arith.constant dense<0.000000e+00> : vector<64x128xf32>
    %75 = tpu.matmul %72, %74, %cst_29 {dimension_numbers = #tpu.dot_dimension_numbers<[1], [0], [0], [1], [0, 0, 1, 1], [], []>} : vector<64x128xbf16>, vector<128x128xbf16>, vector<64x128xf32> -> vector<64x128xf32>
    %76 = vector.broadcast %8 : vector<1x128xf32> to vector<64x128xf32>
    %77 = arith.addf %75, %76 : vector<64x128xf32>
    %78 = arith.addf %3, %77 : vector<64x128xf32>
    %cst_30 = arith.constant dense<0.000000e+00> : vector<64xf32>
    %79 = vector.multi_reduction <add>, %78, %cst_30 [1] : vector<64x128xf32> to vector<64xf32>
    %80 = vector.shape_cast %79 : vector<64xf32> to vector<64x1xf32>
    %cst_31 = arith.constant 1.280000e+02 : f32
    %81 = vector.broadcast %cst_31 : f32 to vector<64x1xf32>
    %82 = arith.divf %80, %81 : vector<64x1xf32>
    %83 = vector.broadcast %82 : vector<64x1xf32> to vector<64x128xf32>
    %84 = arith.subf %78, %83 : vector<64x128xf32>
    %85 = arith.mulf %84, %84 : vector<64x128xf32>
    %cst_32 = arith.constant dense<0.000000e+00> : vector<64xf32>
    %86 = vector.multi_reduction <add>, %85, %cst_32 [1] : vector<64x128xf32> to vector<64xf32>
    %87 = vector.shape_cast %86 : vector<64xf32> to vector<64x1xf32>
    %cst_33 = arith.constant 1.280000e+02 : f32
    %88 = vector.broadcast %cst_33 : f32 to vector<64x1xf32>
    %89 = arith.divf %87, %88 : vector<64x1xf32>
    %cst_34 = arith.constant 9.99999996E-13 : f32
    %90 = vector.broadcast %cst_34 : f32 to vector<64x1xf32>
    %91 = arith.addf %89, %90 : vector<64x1xf32>
    %92 = math.rsqrt %91 : vector<64x1xf32>
    %93 = vector.broadcast %92 : vector<64x1xf32> to vector<64x128xf32>
    %94 = arith.mulf %84, %93 : vector<64x128xf32>
    %95 = vector.broadcast %11 : vector<1x128xf32> to vector<64x128xf32>
    %96 = arith.mulf %94, %95 : vector<64x128xf32>
    %97 = vector.broadcast %12 : vector<1x128xf32> to vector<64x128xf32>
    %98 = arith.addf %96, %97 : vector<64x128xf32>
    %99 = arith.truncf %98 : vector<64x128xf32> to vector<64x128xbf16>
    %c0_35 = arith.constant 0 : index
    %c0_36 = arith.constant 0 : index
    %c0_37 = arith.constant 0 : index
    %100 = vector.load %arg6[%c0_35, %c0_36, %c0_37] : memref<1x128x256xbf16, #tpu.memory_space<vmem>>, vector<1x128x256xbf16>
    %101 = vector.shape_cast %100 : vector<1x128x256xbf16> to vector<128x256xbf16>
    %cst_38 = arith.constant dense<0.000000e+00> : vector<64x256xf32>
    %102 = tpu.matmul %99, %101, %cst_38 {dimension_numbers = #tpu.dot_dimension_numbers<[1], [0], [0], [1], [0, 0, 1, 1], [], []>} : vector<64x128xbf16>, vector<128x256xbf16>, vector<64x256xf32> -> vector<64x256xf32>
    %103 = vector.broadcast %9 : vector<1x256xf32> to vector<64x256xf32>
    %104 = arith.addf %102, %103 : vector<64x256xf32>
    %cst_39 = arith.constant 5.000000e-01 : f32
    %105 = vector.broadcast %cst_39 : f32 to vector<64x256xf32>
    %106 = arith.mulf %105, %104 : vector<64x256xf32>
    %cst_40 = arith.constant 4.471500e-02 : f32
    %107 = vector.broadcast %cst_40 : f32 to vector<64x256xf32>
    %108 = arith.mulf %107, %104 : vector<64x256xf32>
    %109 = arith.mulf %108, %104 : vector<64x256xf32>
    %110 = arith.mulf %109, %104 : vector<64x256xf32>
    %111 = arith.addf %104, %110 : vector<64x256xf32>
    %cst_41 = arith.constant 0.797884583 : f32
    %112 = vector.broadcast %cst_41 : f32 to vector<64x256xf32>
    %113 = arith.mulf %112, %111 : vector<64x256xf32>
    %114 = math.tanh %113 : vector<64x256xf32>
    %cst_42 = arith.constant 1.000000e+00 : f32
    %115 = vector.broadcast %cst_42 : f32 to vector<64x256xf32>
    %116 = arith.addf %115, %114 : vector<64x256xf32>
    %117 = arith.mulf %106, %116 : vector<64x256xf32>
    %118 = arith.truncf %117 : vector<64x256xf32> to vector<64x256xbf16>
    %c0_43 = arith.constant 0 : index
    %c0_44 = arith.constant 0 : index
    %c0_45 = arith.constant 0 : index
    %119 = vector.load %arg7[%c0_43, %c0_44, %c0_45] : memref<1x256x128xbf16, #tpu.memory_space<vmem>>, vector<1x256x128xbf16>
    %120 = vector.shape_cast %119 : vector<1x256x128xbf16> to vector<256x128xbf16>
    %cst_46 = arith.constant dense<0.000000e+00> : vector<64x128xf32>
    %121 = tpu.matmul %118, %120, %cst_46 {dimension_numbers = #tpu.dot_dimension_numbers<[1], [0], [0], [1], [0, 0, 1, 1], [], []>} : vector<64x256xbf16>, vector<256x128xbf16>, vector<64x128xf32> -> vector<64x128xf32>
    %122 = vector.broadcast %10 : vector<1x128xf32> to vector<64x128xf32>
    %123 = arith.addf %121, %122 : vector<64x128xf32>
    %124 = arith.addf %98, %123 : vector<64x128xf32>
    %cst_47 = arith.constant dense<0.000000e+00> : vector<64xf32>
    %125 = vector.multi_reduction <add>, %124, %cst_47 [1] : vector<64x128xf32> to vector<64xf32>
    %126 = vector.shape_cast %125 : vector<64xf32> to vector<64x1xf32>
    %cst_48 = arith.constant 1.280000e+02 : f32
    %127 = vector.broadcast %cst_48 : f32 to vector<64x1xf32>
    %128 = arith.divf %126, %127 : vector<64x1xf32>
    %129 = vector.broadcast %128 : vector<64x1xf32> to vector<64x128xf32>
    %130 = arith.subf %124, %129 : vector<64x128xf32>
    %131 = arith.mulf %130, %130 : vector<64x128xf32>
    %cst_49 = arith.constant dense<0.000000e+00> : vector<64xf32>
    %132 = vector.multi_reduction <add>, %131, %cst_49 [1] : vector<64x128xf32> to vector<64xf32>
    %133 = vector.shape_cast %132 : vector<64xf32> to vector<64x1xf32>
    %cst_50 = arith.constant 1.280000e+02 : f32
    %134 = vector.broadcast %cst_50 : f32 to vector<64x1xf32>
    %135 = arith.divf %133, %134 : vector<64x1xf32>
    %cst_51 = arith.constant 9.99999996E-13 : f32
    %136 = vector.broadcast %cst_51 : f32 to vector<64x1xf32>
    %137 = arith.addf %135, %136 : vector<64x1xf32>
    %138 = math.rsqrt %137 : vector<64x1xf32>
    %139 = vector.broadcast %138 : vector<64x1xf32> to vector<64x128xf32>
    %140 = arith.mulf %130, %139 : vector<64x128xf32>
    %141 = vector.broadcast %13 : vector<1x128xf32> to vector<64x128xf32>
    %142 = arith.mulf %140, %141 : vector<64x128xf32>
    %143 = vector.broadcast %14 : vector<1x128xf32> to vector<64x128xf32>
    %144 = arith.addf %142, %143 : vector<64x128xf32>
    %c0_52 = arith.constant 0 : index
    %c0_53 = arith.constant 0 : index
    %145 = vector.load %arg9[%c0_52, %c0_53] : memref<64x128xf32, #tpu.memory_space<vmem>>, vector<64x128xf32>
    tpu.vector_store %arg9[%c0_52, %c0_53], %144 {strides = array<i32>} : memref<64x128xf32, #tpu.memory_space<vmem>>, vector<64x128xf32>,
    return
  }
  func.func @transform_0(%arg0: i32, %arg1: i32) -> (i32, i32) {
    %c0_i32 = arith.constant 0 : i32
    %c0_i32_0 = arith.constant 0 : i32
    return %arg0, %c0_i32 : i32, i32
  }
  func.func @transform_1(%arg0: i32, %arg1: i32) -> (i32, i32, i32) {
    %c0_i32 = arith.constant 0 : i32
    %c0_i32_0 = arith.constant 0 : i32
    %c0_i32_1 = arith.constant 0 : i32
    return %arg0, %c0_i32, %c0_i32_0 : i32, i32, i32
  }
  func.func @transform_2(%arg0: i32, %arg1: i32) -> (i32, i32, i32) {
    %c0_i32 = arith.constant 0 : i32
    %c0_i32_0 = arith.constant 0 : i32
    %c0_i32_1 = arith.constant 0 : i32
    return %arg1, %c0_i32, %c0_i32_0 : i32, i32, i32
  }
  func.func @transform_3(%arg0: i32, %arg1: i32) -> (i32, i32, i32) {
    %c0_i32 = arith.constant 0 : i32
    %c0_i32_0 = arith.constant 0 : i32
    %c0_i32_1 = arith.constant 0 : i32
    return %arg1, %c0_i32, %c0_i32_0 : i32, i32, i32
  }
  func.func @transform_4(%arg0: i32, %arg1: i32) -> (i32, i32, i32) {
    %c0_i32 = arith.constant 0 : i32
    %c0_i32_0 = arith.constant 0 : i32
    %c0_i32_1 = arith.constant 0 : i32
    return %arg1, %c0_i32, %c0_i32_0 : i32, i32, i32
  }
  func.func @transform_5(%arg0: i32, %arg1: i32) -> (i32, i32, i32) {
    %c0_i32 = arith.constant 0 : i32
    %c0_i32_0 = arith.constant 0 : i32
    %c0_i32_1 = arith.constant 0 : i32
    return %arg1, %c0_i32, %c0_i32_0 : i32, i32, i32
  }
  func.func @transform_6(%arg0: i32, %arg1: i32) -> (i32, i32, i32) {
    %c0_i32 = arith.constant 0 : i32
    %c0_i32_0 = arith.constant 0 : i32
    %c0_i32_1 = arith.constant 0 : i32
    return %arg1, %c0_i32, %c0_i32_0 : i32, i32, i32
  }
  func.func @transform_7(%arg0: i32, %arg1: i32) -> (i32, i32) {
    %c0_i32 = arith.constant 0 : i32
    %c0_i32_0 = arith.constant 0 : i32
    return %arg0, %c0_i32 : i32, i32
  }
}

</mosaic_0001>

<bundles_post_ra>
// kernel: bert_encoder.1
= control target key start
LH: loop header
LB: loop body
LE: loop exit
PB: predicated region body
PF: predicated region fallthrough
CT: control target
= control target key end

     0   :  { %s3683_s24 = smov 0   ;;  %s3685_s25 = smov 0   ;;  %s4384_s0 = inlined_call_operand.vmem [shape: f32[64,128], index: 0, kind: input, shape index: {}]   ;;  %s4385_s1 = inlined_call_operand.vmem [shape: f32[4,1,16], index: 1, kind: input, shape index: {}]   ;;  %s4386_s2 = inlined_call_operand.vmem [shape: bf16[2,128,384], index: 2, kind: input, shape index: {}]   ;;  %s4387_s3 = inlined_call_operand.vmem [shape: bf16[2,128,128], index: 3, kind: input, shape index: {}]   ;;  %s4388_s4 = inlined_call_operand.vmem [shape: bf16[2,128,256], index: 4, kind: input, shape index: {}]   ;;  %s4389_s5 = inlined_call_operand.vmem [shape: bf16[2,256,128], index: 5, kind: input, shape index: {}]   ;;  %s4390_s6 = inlined_call_operand.vmem [shape: f32[2,8,384], index: 6, kind: input, shape index: {}]   ;;  %s4391_s7 = inlined_call_operand.vmem [shape: f32[64,128], index: 7, kind: output, shape index: {}]  }
   0x1   :  { %s3687_s26 = smov 0  }
   0x2 LB: > { %s26_s27 = sadd.s32 1, %s3633_s25  ;;  %p2969_p0 = scmp.ge.s32.totalorder %s3637_s26, 1  ;;  %s3637_s26 = sphi %s3687_s26, %s17_s26   ;;  %s3633_s25 = sphi %s3685_s25, %s4393_s25   ;;  %s3629_s24 = sphi %s3683_s24, %s4392_s24  }
   0x3   : > { %p27_p1 = scmp.ge.s32.totalorder %s26_s27, 2  ;;  %p310_p2 = scmp.lt.s32.totalorder %s3637_s26, 3 }
   0x5   : > { %s4395_s27 = smov (%p27_p1, %s26_s27), 0  ;;  %p311_p3 = pnand %p2969_p0, %p310_p2 }
   0x6   : > { %p382_p4 = scmp.lt.s32.totalorder (!%p311_p3), %s3629_s24, 1  ;;  %p2978_p5 = scmp.ne.s32.totalorder (!%p311_p3), %s3629_s24, 0 }
   0x7   : > { %314 = sbr.rel (%p311_p3) target bundleno = 3026 (0xbd2), region = 48 }
   0xc   : > { %s383_s28 = scalar_select %p382_p4, %s3629_s24, 1 }
   0xe   : > { %s3362_s29 = smul.u32 192, %s383_s28  ;;  %s3087_s30 = sshll.u32 %s383_s28, 6 }
   0xf   : > { %s3704_s10 = scalar_lea.vmem %s4387_s3, %s3087_s30  ;;  %s3088_s11 = sshll.u32 %s383_s28, 7 }
  0x10   : > { %s3709_s14 = scalar_lea.vmem %s4386_s2, %s3362_s29  ;;  %s3714_s17 = scalar_lea.vmem %s4388_s4, %s3088_s11 }
  0x11   : > { %s3719_s20 = scalar_lea.vmem %s4389_s5, %s3088_s11  ;;  %s3363_s21 = smul.u32 24, %s383_s28 }
  0x12   : > { %417 = sbr.rel (%p2978_p5) target bundleno = 28 (0x1c), region = 52 }
  0x13   : > { %s3724_s30 = scalar_lea.vmem %s4390_s6, %s3363_s21 }
  0x17   : > { %v418_v0 = vld [vmem:[%s4384_s0] sm:$0xff]  ;;  %v419_v1 = vld [vmem:[%s4384_s0 + $0x8] sm:$0xff]  ;;  %v420_v2 = vld [vmem:[%s4384_s0 + $0x10] sm:$0xff] }
  0x18   : > { %426 = vst [vmem:[%s4391_s7] sm:$0xff] %v418_v0  ;;  %427 = vst [vmem:[%s4391_s7 + $0x8] sm:$0xff] %v419_v1  ;;  %v421_v3 = vld [vmem:[%s4384_s0 + $0x18] sm:$0xff]  ;;  %v422_v4 = vld [vmem:[%s4384_s0 + $0x20] sm:$0xff] }
  0x19   : > { %428 = vst [vmem:[%s4391_s7 + $0x10] sm:$0xff] %v420_v2  ;;  %v423_v5 = vld [vmem:[%s4384_s0 + $0x28] sm:$0xff]  ;;  %429 = vst [vmem:[%s4391_s7 + $0x18] sm:$0xff] %v421_v3  ;;  %v424_v6 = vld [vmem:[%s4384_s0 + $0x30] sm:$0xff] }
  0x1a   : > { %430 = vst [vmem:[%s4391_s7 + $0x20] sm:$0xff] %v422_v4  ;;  %431 = vst [vmem:[%s4391_s7 + $0x28] sm:$0xff] %v423_v5  ;;  %v425_v7 = vld [vmem:[%s4384_s0 + $0x38] sm:$0xff] }
  0x1b   : > { %432 = vst [vmem:[%s4391_s7 + $0x30] sm:$0xff] %v424_v6  ;;  %433 = vst [vmem:[%s4391_s7 + $0x38] sm:$0xff] %v425_v7 }
  0x1c PF: > { %v3392_v8 = vld [vmem:[%s3709_s14 + $0xac] ss:$12 sps:$4 sm:$0xff]   ;;  %v3394_v9 = vld [vmem:[%s3709_s14 + $0xa8] ss:$12 sps:$4 sm:$0xff]   ;;  %v3639_v10 = vmov 0   ;;  %v3640_v45 = vmov 0.0   ;;  %v481_v46 = vlaneseq }
  0x1d   : > { %653 = vmatprep.mubr.bf16.mxu0 %v3639_v10  ;;  %621 = vmatprep.subr.bf16.mxu0 %v3392_v8  ;;  %v3395_v11 = vld [vmem:[%s3709_s14 + $0x94] ss:$12 sps:$4 sm:$0xff]   ;;  %v3397_v12 = vld [vmem:[%s3709_s14 + $0x90] ss:$12 sps:$4 sm:$0xff]   ;;  %v3400_v14 = vld [vmem:[%s3709_s14 + $0x78] ss:$12 sps:$4 sm:$0xff]  }
  0x1e   : > { %622 = vmatpush1.bf16.msra.mxu0 %v3394_v9  ;;  %v3398_v13 = vld [vmem:[%s3709_s14 + $0x7c] ss:$12 sps:$4 sm:$0xff]   ;;  %v3401_v15 = vld [vmem:[%s3709_s14 + $0x64] ss:$12 sps:$4 sm:$0xff]   ;;  %v3403_v17 = vld [vmem:[%s3709_s14 + $0x60] ss:$12 sps:$4 sm:$0xff]  }
  0x1f   : > { %623 = vmatprep.subr.bf16.mxu0 %v3395_v11  ;;  %v434_v16 = vld [vmem:[%s4391_s7] sm:$0xff]  ;;  %v435_v18 = vld [vmem:[%s4391_s7 + $0x8] sm:$0xff]  ;;  %v3416_v22 = vld [vmem:[%s3709_s14 + $0xb0] ss:$12 sps:$4 sm:$0xff]   ;;  %vm3641_vm0 = vmmov 0   ;;  %v3832_v47 = vshrl.u32 %v481_v46, 7 }
  0x20   : > { %v3404_v19 = vld [vmem:[%s3709_s14 + $0x4c] ss:$12 sps:$4 sm:$0xff]   ;;  %v442_v20 = vpack.c.bf16 %v435_v18, %v434_v16  ;;  %v3406_v21 = vld [vmem:[%s3709_s14 + $0x48] ss:$12 sps:$4 sm:$0xff]   ;;  %3202 = vmatprep.subr.bf16.mxu1 %v3416_v22  ;;  %v3409_v26 = vld [vmem:[%s3709_s14 + $0x30] ss:$12 sps:$4 sm:$0xff]  }
  0x21   : > { %v3417_v23 = vld [vmem:[%s3709_s14 + $0x98] ss:$12 sps:$4 sm:$0xff]   ;;  %v3407_v24 = vld [vmem:[%s3709_s14 + $0x34] ss:$12 sps:$4 sm:$0xff]   ;;  %3203 = vmatpush3.bf16.msra.mxu1 %v3416_v22  ;;  %v3410_v27 = vld [vmem:[%s3709_s14 + $0x1c] ss:$12 sps:$4 sm:$0xff]  }
  0x22   : > { %624 = vmatpush1.bf16.msra.mxu0 %v3397_v12  ;;  %3218 = vmatprep.mubr.bf16.mxu1 %v442_v20  ;;  %v3418_v25 = vld [vmem:[%s3709_s14 + $0x80] ss:$12 sps:$4 sm:$0xff]   ;;  %v3412_v28 = vld [vmem:[%s3709_s14 + $0x18] ss:$12 sps:$4 sm:$0xff]   ;;  %v3419_v29 = vld [vmem:[%s3709_s14 + $0x68] ss:$12 sps:$4 sm:$0xff]  }
  0x23   : > { %625 = vmatprep.subr.bf16.mxu0 %v3398_v13  ;;  %3204 = vmatprep.subr.bf16.mxu1 %v3417_v23  ;;  %v3413_v30 = vld [vmem:[%s3709_s14 + $0x4] ss:$12 sps:$4 sm:$0xff]   ;;  %v3415_v32 = vld [vmem:[%s3709_s14] ss:$12 sps:$4 sm:$0xff]   ;;  %v437_v36 = vld [vmem:[%s4391_s7 + $0x18] sm:$0xff]  ;;  %v483_v50 = vsub.s32 0, %v3832_v47 }
  0x24   : > { %v3420_v31 = vld [vmem:[%s3709_s14 + $0x50] ss:$12 sps:$4 sm:$0xff]   ;;  %v3421_v33 = vld [vmem:[%s3709_s14 + $0x38] ss:$12 sps:$4 sm:$0xff]   ;;  %v3422_v34 = vld [vmem:[%s3709_s14 + $0x20] ss:$12 sps:$4 sm:$0xff]  }
  0x25   : > { %3205 = vmatpush3.bf16.msra.mxu1 %v3417_v23  ;;  %v436_v35 = vld [vmem:[%s4391_s7 + $0x10] sm:$0xff]  ;;  %v438_v39 = vld [vmem:[%s4391_s7 + $0x20] sm:$0xff]  ;;  %v439_v40 = vld [vmem:[%s4391_s7 + $0x28] sm:$0xff]  ;;  %vm775_vm1 = vcmask 523264   ;;  %vm1004_vm2 = vcmask 130048   ;;  %s3642_s24 = smov 64  }
  0x26   : > { %626 = vmatpush1.bf16.msra.mxu0 %v3400_v14  ;;  %3206 = vmatprep.subr.bf16.mxu1 %v3418_v25  ;;  %v3423_v37 = vld [vmem:[%s3709_s14 + $0x8] ss:$12 sps:$4 sm:$0xff]   ;;  %v443_v38 = vpack.c.bf16 %v437_v36, %v436_v35  ;;  %v444_v41 = vpack.c.bf16 %v439_v40, %v438_v39  ;;  %v441_v43 = vld [vmem:[%s4391_s7 + $0x38] sm:$0xff]  ;;  %v446_v57 = vld [vmem:[%s3724_s30] sm:$0xff]  ;;  %vm1305_vm3 = vcmask 519168   ;;  %vm1874_vm4 = vcmask 1043968  }
  0x27   : > { %627 = vmatprep.subr.bf16.mxu0 %v3401_v15  ;;  %v440_v42 = vld [vmem:[%s4391_s7 + $0x30] sm:$0xff]  ;;  %v447_v49 = vld [vmem:[%s3724_s30 + $0x8] sm:$0xff]  ;;  %v484_v61 = vrot.slane %v446_v57, %v483_v50 }
  0x28   : > { %v445_v44 = vpack.c.bf16 %v441_v43, %v440_v42  ;;  %v3836_v52 = vrot.slane %v447_v49, %v483_v50  ;;  %v448_v12 = vld [vmem:[%s3724_s30 + $0x10] sm:$0xff] }
  0x29   : > { %3207 = vmatpush3.bf16.msra.mxu1 %v3418_v25  ;;  %v492_v18 = vrot.slane %v448_v12, %v483_v50 }
  0x2a   : > { %628 = vmatpush1.bf16.msra.mxu0 %v3403_v17  ;;  %3208 = vmatprep.subr.bf16.mxu1 %v3419_v29 }
  0x2b   : > { %629 = vmatprep.subr.bf16.mxu0 %v3404_v19 }
  0x2d   : > { %3209 = vmatpush3.bf16.msra.mxu1 %v3419_v29 }
  0x2e   : > { %630 = vmatpush1.bf16.msra.mxu0 %v3406_v21  ;;  %3210 = vmatprep.subr.bf16.mxu1 %v3420_v31 }
  0x2f   : > { %631 = vmatprep.subr.bf16.mxu0 %v3407_v24 }
  0x31   : > { %3211 = vmatpush3.bf16.msra.mxu1 %v3420_v31 }
  0x32   : > { %632 = vmatpush1.bf16.msra.mxu0 %v3409_v26  ;;  %3212 = vmatprep.subr.bf16.mxu1 %v3421_v33 }
  0x33   : > { %633 = vmatprep.subr.bf16.mxu0 %v3410_v27 }
  0x35   : > { %3213 = vmatpush3.bf16.msra.mxu1 %v3421_v33 }
  0x36   : > { %634 = vmatpush1.bf16.msra.mxu0 %v3412_v28  ;;  %3214 = vmatprep.subr.bf16.mxu1 %v3422_v34 }
  0x37   : > { %635 = vmatprep.subr.bf16.mxu0 %v3413_v30 }
  0x39   : > { %3215 = vmatpush3.bf16.msra.mxu1 %v3422_v34 }
  0x3a   : > { %636 = vmatpush1.bf16.msra.mxu0 %v3415_v32  ;;  %3216 = vmatprep.subr.bf16.mxu1 %v3423_v37 }
  0x3b   : > { %3238 = vmatprep.subr.bf16.mxu0 %v3640_v45 }
  0x3d   : > { %654 = vmatmul.mubr.bf16.vlgmr.msra.gmra.mxu0 %v442_v20  ;;  %3217 = vmatpush3.bf16.msra.mxu1 %v3423_v37 }
  0x3e   : > { %663 = vmatprep.mubr.bf16.mxu0 %v3639_v10  ;;  %3226 = vmatprep.subr.bf16.mxu1 %v3640_v45 }
  0x40   : > { %3219 = vmatmul.mubr.bf16.vlgmr.msra.gmra.mxu1 %v443_v38 }
  0x41   : > { %3222 = vmatprep.mubr.bf16.mxu1 %v444_v41 }
  0x45   : > { %664 = vmatmul.mubr.bf16.gmra.mxu0 %v443_v38 }
  0x46   : > { %673 = vmatprep.mubr.bf16.mxu0 %v3639_v10 }
  0x48   : > { %3223 = vmatmul.mubr.bf16.gmra.mxu1 %v445_v44 }
  0x49   : > { %3228 = vmatprep.mubr.msk.bf16.mxu1 %vm3641_vm0, %v3640_v45 }
  0x4d   : > { %674 = vmatmul.mubr.bf16.gmra.mxu0 %v444_v41 }
  0x4e   : > { %683 = vmatprep.mubr.bf16.mxu0 %v3639_v10 }
  0x55   : > { %684 = vmatmul.mubr.bf16.gmra.mxu0 %v445_v44 }
  0x56   : > { %3240 = vmatprep.mubr.msk.bf16.mxu0 %vm3641_vm0, %v3640_v45 }
  0xfd   : > { %v655_v48 = vpop.f32.mrf.mxu0 }
  0xfe   : > { %v656_v3 = vadd.f32 %v655_v48, %v484_v61 }
  0xff   : > { %v657_v51 = vpop.f32.mrf.mxu0 }
 0x100   : > { %v658_v55 = vadd.f32 %v657_v51, %v3836_v52  ;;  %v3220_v2 = vpop.f32.mrf.mxu1 }
 0x101   : > { %v659_v53 = vpop.f32.mrf.mxu0 }
 0x102   : > { %v660_v0 = vadd.f32 %v659_v53, %v484_v61  ;;  %v728_v7 = vpop.f32.mrf.mxu1 }
 0x103   : > { %v661_v54 = vpop.f32.mrf.mxu0  ;;  %v729_v35 = vadd.f32 %v728_v7, %v492_v18 }
 0x104   : > { %v662_v56 = vadd.f32 %v661_v54, %v3836_v52  ;;  %v3848_v8 = vpack.c.bf16 %v660_v0, %v656_v3  ;;  %v3221_v13 = vpop.f32.mrf.mxu1 }
 0x105   : > { %v665_v58 = vpop.f32.mrf.mxu0 }
 0x106   : > { %v3841_v59 = vpack.c.bf16 %v662_v56, %v658_v55  ;;  %v731_v16 = vpop.f32.mrf.mxu1  ;;  %v666_v21 = vadd.f32 %v665_v58, %v484_v61  ;;  %v737_v55 = vadd.f32 %v3220_v2, %v492_v18  ;;  %v740_v56 = vadd.f32 %v3221_v13, %v492_v18 }
 0x107   : > { %v667_v60 = vpop.f32.mrf.mxu0  ;;  %v732_v36 = vadd.f32 %v731_v16, %v492_v18 }
 0x108   : > { %v780_v62 = vsel %vm775_vm1, %v3841_v59, 0  ;;  %v668_v4 = vadd.f32 %v667_v60, %v3836_v52  ;;  %v3224_v20 = vpop.f32.mrf.mxu1  ;;  %v3896_v57 = vpack.c.bf16 %v740_v56, %v737_v55  ;;  %v3907_v60 = vld [vmem:[%s4385_s1] ss:$0 sm:$0xff] }
 0x109   : > { %v669_v63 = vpop.f32.mrf.mxu0  ;;  %3227 = vmatpush3.bf16.xpose.msra.mxu1 %v780_v62  ;;  %v753_v24 = vadd.f32 %v3224_v20, %v492_v18  ;;  %v3879_v48 = vpack.c.bf16 %v732_v36, %v729_v35  ;;  %v3924_v20 = vld [vmem:[%s4385_s1 + $0x2] ss:$0 sm:$0xff] }
 0x10a   : > { %3232 = vmatprep.subr.bf16.mxu1 %v3640_v45  ;;  %v670_v17 = vadd.f32 %v669_v63, %v484_v61  ;;  %v744_v26 = vpop.f32.mrf.mxu1 }
 0x10b   : > { %v671_v1 = vpop.f32.mrf.mxu0  ;;  %v745_v29 = vadd.f32 %v744_v26, %v492_v18 }
 0x10c   : > { %v672_v5 = vadd.f32 %v671_v1, %v3836_v52  ;;  %v3862_v27 = vpack.c.bf16 %v670_v17, %v666_v21  ;;  %v3225_v31 = vpop.f32.mrf.mxu1 }
 0x10d   : > { %v675_v6 = vpop.f32.mrf.mxu0  ;;  %v756_v33 = vadd.f32 %v3225_v31, %v492_v18 }
 0x10e   : > { %v3850_v9 = vpack.c.bf16 %v672_v5, %v668_v4  ;;  %v747_v37 = vpop.f32.mrf.mxu1  ;;  %v676_v43 = vadd.f32 %v675_v6, %v484_v61  ;;  %v3915_v6 = vld [vmem:[%s4385_s1 + $0x1] ss:$0 sm:$0xff] }
 0x10f   : > { %v677_v11 = vpop.f32.mrf.mxu0  ;;  %v3873_v40 = vpack.c.bf16 %v756_v33, %v753_v24  ;;  %v748_v41 = vadd.f32 %v747_v37, %v492_v18  ;;  %v3933_v33 = vld [vmem:[%s4385_s1 + $0x3] ss:$0 sm:$0xff] }
 0x110   : > { %3229 = vmatmul.mubr.msk.bf16.vlgmr.msra.gmra.mxu1 %vm775_vm1, %v3848_v8  ;;  %v827_v14 = vsel %vm775_vm1, %v3850_v9, 0  ;;  %v678_v22 = vadd.f32 %v677_v11, %v3836_v52 }
 0x111   : > { %v679_v15 = vpop.f32.mrf.mxu0  ;;  %3233 = vmatpush3.bf16.xpose.msra.mxu1 %v827_v14  ;;  %3234 = vmatprep.mubr.msk.bf16.mxu1 %vm3641_vm0, %v3640_v45  ;;  %v3877_v46 = vpack.c.bf16 %v748_v41, %v745_v29 }
 0x112   : > { %3244 = vmatprep.subr.bf16.mxu1 %v3640_v45  ;;  %v680_v38 = vadd.f32 %v679_v15, %v484_v61 }
 0x113   : > { %v681_v19 = vpop.f32.mrf.mxu0 }
 0x114   : > { %v682_v23 = vadd.f32 %v681_v19, %v3836_v52  ;;  %v3881_v49 = vpack.c.bf16 %v680_v38, %v676_v43 }
 0x115   : > { %v685_v25 = vpop.f32.mrf.mxu0 }
 0x116   : > { %v3864_v28 = vpack.c.bf16 %v682_v23, %v678_v22  ;;  %v686_v51 = vadd.f32 %v685_v25, %v484_v61 }
 0x117   : > { %v687_v30 = vpop.f32.mrf.mxu0 }
 0x118   : > { %3235 = vmatmul.mubr.msk.bf16.vlgmr.msra.gmra.mxu1 %vm775_vm1, %v3862_v27  ;;  %v874_v32 = vsel %vm775_vm1, %v3864_v28, 0  ;;  %v688_v39 = vadd.f32 %v687_v30, %v3836_v52 }
 0x119   : > { %v689_v34 = vpop.f32.mrf.mxu0  ;;  %3239 = vmatpush3.bf16.xpose.msra.mxu0 %v874_v32  ;;  %3246 = vmatprep.mubr.msk.bf16.mxu1 %vm3641_vm0, %v3640_v45 }
 0x11a   : > { %3250 = vmatprep.subr.bf16.mxu0 %v3640_v45  ;;  %v690_v53 = vadd.f32 %v689_v34, %v484_v61 }
 0x11b   : > { %v691_v42 = vpop.f32.mrf.mxu0 }
 0x11c   : > { %v692_v44 = vadd.f32 %v691_v42, %v3836_v52  ;;  %v3894_v52 = vpack.c.bf16 %v690_v53, %v686_v51 }
 0x11e   : > { %v3883_v50 = vpack.c.bf16 %v692_v44, %v688_v39 }
 0x120   : > { %3241 = vmatmul.mubr.msk.bf16.vlgmr.msra.gmra.mxu0 %vm775_vm1, %v3881_v49  ;;  %v921_v54 = vsel %vm775_vm1, %v3883_v50, 0 }
 0x121   : > { %3245 = vmatpush3.bf16.xpose.msra.mxu1 %v921_v54  ;;  %3251 = vmatpush3.bf16.msra.mxu0 %v3879_v48 }
 0x122   : > { %3256 = vmatprep.subr.bf16.mxu1 %v3640_v45  ;;  %3252 = vmatprep.mubr.msk.bf16.mxu0 %vm3641_vm0, %v3640_v45 }
 0x123   : > { %3262 = vmatprep.subr.bf16.mxu0 %v3640_v45 }
 0x128   : > { %3247 = vmatmul.mubr.msk.bf16.vlgmr.msra.gmra.mxu1 %vm775_vm1, %v3894_v52 }
 0x129   : > { %3257 = vmatpush3.bf16.msra.mxu1 %v3896_v57  ;;  %3258 = vmatprep.mubr.msk.bf16.mxu1 %vm3641_vm0, %v3640_v45 }
 0x12a   : > { %3268 = vmatprep.subr.bf16.mxu1 %v3640_v45 }
 0x1d0   : > { %v816_v58 = vpop.f32.mrf.mxu1 }
 0x1d1   : > { %v964_v61 = vmul.f32 0.125, %v816_v58 }
 0x1d2   : > { %v3230_v62 = vpop.f32.mrf.mxu1 }
 0x1d3   : > { %v996_v63 = vadd.f32 %v3907_v60, %v964_v61 }
 0x1d4   : > { %v819_v0 = vpop.f32.mrf.mxu1 }
 0x1d5   : > { %v965_v1 = vmul.f32 0.125, %v819_v0  ;;  %v1005_v2 = vsel %vm1004_vm2, %v996_v63, -inf }
 0x1d6   : > { %1006 = vmax.xlane.f32.xlu0 %v1005_v2  ;;  %v3231_v3 = vpop.f32.mrf.mxu1 }
 0x1d7   : > { %v997_v4 = vadd.f32 %v3907_v60, %v965_v1 }
 0x1d8   : > { %v863_v5 = vpop.f32.mrf.mxu1 }
 0x1d9   : > { %v966_v7 = vmul.f32 0.125, %v863_v5  ;;  %v1008_v11 = vsel %vm1004_vm2, %v997_v4, -inf }
 0x1da   : > { %1009 = vmax.xlane.f32.xlu0 %v1008_v11  ;;  %v3236_v12 = vpop.f32.mrf.mxu1 }
 0x1db   : > { %v998_v13 = vadd.f32 %v3915_v6, %v966_v7 }
 0x1dc   : > { %v866_v14 = vpop.f32.mrf.mxu1 }
 0x1dd   : > { %v967_v15 = vmul.f32 0.125, %v866_v14  ;;  %v1011_v16 = vsel %vm1004_vm2, %v998_v13, -inf }
 0x1de   : > { %1012 = vmax.xlane.f32.xlu1 %v1011_v16  ;;  %v3237_v17 = vpop.f32.mrf.mxu1 }
 0x1df   : > { %v999_v18 = vadd.f32 %v3915_v6, %v967_v15 }
 0x1e0   : > { %v910_v19 = vpop.f32.mrf.mxu0 }
 0x1e1   : > { %v968_v21 = vmul.f32 0.125, %v910_v19  ;;  %v1014_v22 = vsel %vm1004_vm2, %v999_v18, -inf }
 0x1e2   : > { %v3242_v23 = vpop.f32.mrf.mxu0  ;;  %1015 = vmax.xlane.f32.xlu1 %v1014_v22 }
 0x1e3   : > { %v1000_v24 = vadd.f32 %v3924_v20, %v968_v21 }
 0x1e4   : > { %v913_v25 = vpop.f32.mrf.mxu0 }
 0x1e5   : > { %v969_v26 = vmul.f32 0.125, %v913_v25  ;;  %v1017_v29 = vsel %vm1004_vm2, %v1000_v24, -inf }
 0x1e6   : > { %v3243_v30 = vpop.f32.mrf.mxu0  ;;  %1018 = vmax.xlane.f32.xlu0 %v1017_v29 }
 0x1e7   : > { %v1001_v31 = vadd.f32 %v3924_v20, %v969_v26 }
 0x1e8   : > { %v957_v32 = vpop.f32.mrf.mxu1 }
 0x1e9   : > { %v970_v34 = vmul.f32 0.125, %v957_v32  ;;  %v1020_v35 = vsel %vm1004_vm2, %v1001_v31, -inf }
 0x1ea   : > { %1021 = vmax.xlane.f32.xlu1 %v1020_v35  ;;  %v3248_v36 = vpop.f32.mrf.mxu1 }
 0x1eb   : > { %v1002_v37 = vadd.f32 %v3933_v33, %v970_v34 }
 0x1ec   : > { %v960_v38 = vpop.f32.mrf.mxu1 }
 0x1ed   : > { %v971_v39 = vmul.f32 0.125, %v960_v38  ;;  %v1023_v41 = vsel %vm1004_vm2, %v1002_v37, -inf }
 0x1ee   : > { %1024 = vmax.xlane.f32.xlu0 %v1023_v41  ;;  %v3249_v42 = vpop.f32.mrf.mxu1 }
 0x1ef   : > { %v1003_v43 = vadd.f32 %v3933_v33, %v971_v39 }
 0x1f1   : > { %v1026_v44 = vsel %vm1004_vm2, %v1003_v43, -inf }
 0x1f2   : > { %1027 = vmax.xlane.f32.xlu1 %v1026_v44 }
 0x25f   : > { %v1007_v51 = vpop.xlane.xlu0 %1006 }
 0x260   : > { %v1029_v53 = vsub.f32 %v996_v63, %v1007_v51 }
 0x262   : > { %v1037_v54 = vmul.f32 1.442695, %v1029_v53 }
 0x263   : > { %v1010_v55 = vpop.xlane.xlu0 %1009 }
 0x264   : > { %3476 = vpow2.f32 %v1037_v54  ;;  %v1030_v56 = vsub.f32 %v997_v4, %v1010_v55 }
 0x266   : > { %v1039_v58 = vmul.f32 1.442695, %v1030_v56 }
 0x267   : > { %v1013_v61 = vpop.xlane.xlu1 %1012 }
 0x268   : > { %3478 = vpow2.f32 %v1039_v58  ;;  %v1031_v62 = vsub.f32 %v998_v13, %v1013_v61 }
 0x26a   : > { %v1041_v0 = vmul.f32 1.442695, %v1031_v62 }
 0x26b   : > { %v1016_v1 = vpop.xlane.xlu1 %1015 }
 0x26c   : > { %3480 = vpow2.f32 %v1041_v0  ;;  %v1032_v2 = vsub.f32 %v999_v18, %v1016_v1 }
 0x26e   : > { %v1043_v3 = vmul.f32 1.442695, %v1032_v2 }
 0x26f   : > { %v1019_v5 = vpop.xlane.xlu0 %1018 }
 0x270   : > { %3482 = vpow2.f32 %v1043_v3  ;;  %v1033_v7 = vsub.f32 %v1000_v24, %v1019_v5 }
 0x271   : > { %v3477_v11 = vpop.eup %3476 }
 0x272   : > { %v1045_v12 = vmul.f32 1.442695, %v1033_v7  ;;  %v1053_v63 = vsel %vm1004_vm2, %v3477_v11, 0.0 }
 0x273   : > { %v1022_v14 = vpop.xlane.xlu1 %1021  ;;  %1054 = vadd.xlane.f32.xlu0 %v1053_v63 }
 0x274   : > { %3484 = vpow2.f32 %v1045_v12  ;;  %v1034_v4 = vsub.f32 %v1001_v31, %v1022_v14 }
 0x275   : > { %v3479_v15 = vpop.eup %3478 }
 0x276   : > { %v1047_v16 = vmul.f32 1.442695, %v1034_v4  ;;  %v1056_v13 = vsel %vm1004_vm2, %v3479_v15, 0.0 }
 0x277   : > { %v1025_v17 = vpop.xlane.xlu0 %1024  ;;  %1057 = vadd.xlane.f32.xlu1 %v1056_v13 }
 0x278   : > { %3486 = vpow2.f32 %v1047_v16  ;;  %v1035_v18 = vsub.f32 %v1002_v37, %v1025_v17 }
 0x279   : > { %v3481_v19 = vpop.eup %3480 }
 0x27a   : > { %v1049_v21 = vmul.f32 1.442695, %v1035_v18  ;;  %v1059_v22 = vsel %vm1004_vm2, %v3481_v19, 0.0 }
 0x27b   : > { %1060 = vadd.xlane.f32.xlu0 %v1059_v22  ;;  %v1028_v34 = vpop.xlane.xlu1 %1027 }
 0x27c   : > { %3488 = vpow2.f32 %v1049_v21  ;;  %v1036_v35 = vsub.f32 %v1003_v43, %v1028_v34 }
 0x27d   : > { %v3483_v23 = vpop.eup %3482 }
 0x27e   : > { %v1062_v24 = vsel %vm1004_vm2, %v3483_v23, 0.0  ;;  %v1051_v36 = vmul.f32 1.442695, %v1036_v35 }
 0x27f   : > { %1063 = vadd.xlane.f32.xlu1 %v1062_v24 }
 0x280   : > { %3490 = vpow2.f32 %v1051_v36 }
 0x281   : > { %v3485_v25 = vpop.eup %3484 }
 0x282   : > { %v1065_v26 = vsel %vm1004_vm2, %v3485_v25, 0.0 }
 0x283   : > { %1066 = vadd.xlane.f32.xlu0 %v1065_v26 }
 0x285   : > { %v3487_v29 = vpop.eup %3486 }
 0x286   : > { %v1068_v30 = vsel %vm1004_vm2, %v3487_v29, 0.0 }
 0x287   : > { %1069 = vadd.xlane.f32.xlu1 %v1068_v30 }
 0x289   : > { %v3946_v31 = vpop.eup %3488 }
 0x28a   : > { %v1071_v32 = vsel %vm1004_vm2, %v3946_v31, 0.0 }
 0x28b   : > { %1072 = vadd.xlane.f32.xlu0 %v1071_v32 }
 0x28d   : > { %v3958_v37 = vpop.eup %3490 }
 0x28e   : > { %v1074_v38 = vsel %vm1004_vm2, %v3958_v37, 0.0 }
 0x298   : > { %1371 = vrot.lane.b32.xlu1 %v3850_v9, %s3642_s24 }
 0x2a1   : > { %1318 = vrot.lane.b32.xlu0 %v3841_v59, %s3642_s24 }
 0x2a5   : > { %1424 = vrot.lane.b32.xlu0 %v3864_v28, %s3642_s24 }
 0x2a9   : > { %1421 = vrot.lane.b32.xlu0 %v3881_v49, %s3642_s24 }
 0x2bc   : > { %1075 = vadd.xlane.f32.xlu1 %v1074_v38 }
 0x2cd   : > { %1315 = vrot.lane.b32.xlu1 %v3848_v8, %s3642_s24 }
 0x2d1   : > { %1368 = vrot.lane.b32.xlu1 %v3862_v27, %s3642_s24 }
 0x2d5   : > { %1477 = vrot.lane.b32.xlu1 %v3883_v50, %s3642_s24 }
 0x2d9   : > { %1474 = vrot.lane.b32.xlu1 %v3894_v52, %s3642_s24 }
 0x2fc   : > { %v1055_v59 = vpop.xlane.xlu0 %1054 }
 0x2fd   : > { %3492 = vrcp.f32 %v1055_v59 }
 0x300   : > { %v1058_v9 = vpop.xlane.xlu1 %1057 }
 0x301   : > { %3494 = vrcp.f32 %v1058_v9 }
 0x304   : > { %v1061_v28 = vpop.xlane.xlu0 %1060 }
 0x305   : > { %3496 = vrcp.f32 %v1061_v28 }
 0x308   : > { %v1064_v49 = vpop.xlane.xlu1 %1063 }
 0x309   : > { %3498 = vrcp.f32 %v1064_v49 }
 0x30a   : > { %v3493_v39 = vpop.eup %3492 }
 0x30b   : > { %v1078_v42 = vmul.f32 %v3493_v39, %v3477_v11 }
 0x30c   : > { %v1067_v41 = vpop.xlane.xlu0 %1066 }
 0x30d   : > { %3500 = vrcp.f32 %v1067_v41 }
 0x30e   : > { %v3495_v8 = vpop.eup %3494 }
 0x30f   : > { %v1080_v27 = vmul.f32 %v3495_v8, %v3479_v15 }
 0x310   : > { %v1070_v43 = vpop.xlane.xlu1 %1069 }
 0x311   : > { %3502 = vrcp.f32 %v1070_v43  ;;  %v1093_v50 = vpack.c.bf16 %v1080_v27, %v1078_v42 }
 0x312   : > { %v3497_v52 = vpop.eup %3496 }
 0x313   : > { %3253 = vmatmul.mubr.msk.bf16.vlgmr.msra.gmra.mxu0 %vm1004_vm2, %v1093_v50  ;;  %v1082_v51 = vmul.f32 %v3497_v52, %v3481_v19 }
 0x314   : > { %3263 = vmatpush3.bf16.msra.mxu0 %v3877_v46  ;;  %3264 = vmatprep.mubr.msk.bf16.mxu0 %vm3641_vm0, %v3640_v45  ;;  %v1073_v55 = vpop.xlane.xlu0 %1072  ;;  %v1372_v3 = vpop.permute.xlu1 %1371 }
 0x315   : > { %3274 = vmatprep.subr.bf16.mxu0 %v3640_v45  ;;  %3504 = vrcp.f32 %v1073_v55  ;;  %v1377_v18 = vsel %vm775_vm1, %v1372_v3, 0 }
 0x316   : > { %v3499_v44 = vpop.eup %3498 }
 0x317   : > { %v1084_v53 = vmul.f32 %v3499_v44, %v3483_v23 }
 0x318   : > { %v1319_v0 = vpop.permute.xlu0 %1318 }
 0x319   : > { %v1094_v54 = vpack.c.bf16 %v1084_v53, %v1082_v51  ;;  %v1324_v2 = vsel %vm775_vm1, %v1319_v0, 0 }
 0x31a   : > { %v3501_v56 = vpop.eup %3500 }
 0x31b   : > { %3259 = vmatmul.mubr.msk.bf16.vlgmr.msra.gmra.mxu1 %vm1004_vm2, %v1094_v54  ;;  %v1086_v61 = vmul.f32 %v3501_v56, %v3485_v25 }
 0x31c   : > { %3269 = vmatpush3.bf16.msra.mxu1 %v3873_v40  ;;  %3270 = vmatprep.mubr.msk.bf16.mxu1 %vm3641_vm0, %v3640_v45  ;;  %v1425_v7 = vpop.permute.xlu0 %1424 }
 0x31d   : > { %3280 = vmatprep.subr.bf16.mxu1 %v3640_v45  ;;  %v1430_v12 = vsel %vm775_vm1, %v1425_v7, 0 }
 0x31e   : > { %v3503_v58 = vpop.eup %3502 }
 0x31f   : > { %v1088_v62 = vmul.f32 %v3503_v58, %v3487_v29 }
 0x320   : > { %v1422_v14 = vpop.permute.xlu0 %1421 }
 0x321   : > { %v1095_v1 = vpack.c.bf16 %v1088_v62, %v1086_v61 }
 0x322   : > { %v3505_v63 = vpop.eup %3504 }
 0x323   : > { %3265 = vmatmul.mubr.msk.bf16.vlgmr.msra.gmra.mxu0 %vm1004_vm2, %v1095_v1  ;;  %v1090_v15 = vmul.f32 %v3505_v63, %v3946_v31 }
 0x324   : > { %3275 = vmatpush3.bf16.xpose.msra.mxu0 %v1324_v2  ;;  %3276 = vmatprep.mubr.msk.bf16.mxu0 %vm3641_vm0, %v3640_v45 }
 0x325   : > { %3286 = vmatprep.subr.bf16.mxu0 %v3640_v45 }
 0x345   : > { %v1076_v5 = vpop.xlane.xlu1 %1075 }
 0x346   : > { %3506 = vrcp.f32 %v1076_v5 }
 0x349   : > { %v1316_v11 = vpop.permute.xlu1 %1315 }
 0x34a   : > { %3277 = vmatmul.mubr.msk.bf16.vlgmr.msra.gmra.mxu0 %vm775_vm1, %v1316_v11 }
 0x34b   : > { %3287 = vmatpush3.bf16.xpose.msra.mxu0 %v1430_v12  ;;  %3288 = vmatprep.mubr.msk.bf16.mxu0 %vm3641_vm0, %v3640_v45 }
 0x34c   : > { %3298 = vmatprep.subr.bf16.mxu0 %v3640_v45 }
 0x34d   : > { %v1369_v17 = vpop.permute.xlu1 %1368 }
 0x351   : > { %v1478_v19 = vpop.permute.xlu1 %1477 }
 0x352   : > { %3289 = vmatmul.mubr.msk.bf16.vlgmr.msra.gmra.mxu0 %vm775_vm1, %v1422_v14  ;;  %v1483_v21 = vsel %vm775_vm1, %v1478_v19, 0 }
 0x353   : > { %v3507_v4 = vpop.eup %3506  ;;  %3300 = vmatprep.mubr.msk.bf16.mxu0 %vm3641_vm0, %v3640_v45 }
 0x354   : > { %v1092_v16 = vmul.f32 %v3507_v4, %v3958_v37 }
 0x355   : > { %v1475_v22 = vpop.permute.xlu1 %1474 }
 0x356   : > { %v1096_v13 = vpack.c.bf16 %v1092_v16, %v1090_v15 }
 0x358   : > { %3271 = vmatmul.mubr.msk.bf16.vlgmr.msra.gmra.mxu1 %vm1004_vm2, %v1096_v13 }
 0x359   : > { %3281 = vmatpush3.bf16.xpose.msra.mxu1 %v1377_v18  ;;  %3282 = vmatprep.mubr.msk.bf16.mxu1 %vm3641_vm0, %v3640_v45 }
 0x35a   : > { %3292 = vmatprep.subr.bf16.mxu1 %v3640_v45 }
 0x360   : > { %3283 = vmatmul.mubr.msk.bf16.vlgmr.msra.gmra.mxu1 %vm775_vm1, %v1369_v17 }
 0x361   : > { %3293 = vmatpush3.bf16.xpose.msra.mxu1 %v1483_v21  ;;  %3294 = vmatprep.mubr.msk.bf16.mxu1 %vm3641_vm0, %v3640_v45 }
 0x362   : > { %3304 = vmatprep.subr.bf16.mxu1 %v3640_v45 }
 0x368   : > { %3295 = vmatmul.mubr.msk.bf16.vlgmr.msra.gmra.mxu1 %vm775_vm1, %v1475_v22 }
 0x369   : > { %3306 = vmatprep.mubr.msk.bf16.mxu1 %vm3641_vm0, %v3640_v45 }
 0x3d3   : > { %v1134_v23 = vpop.f32.mrf.mxu0 }
 0x3d4   : > { %v3090_v24 = vpack.c.bf16 %v1134_v23, %v1134_v23 }
 0x3d5   : > { %v3254_v25 = vpop.f32.mrf.mxu0 }
 0x3d6   : > { %1306 = vst.msk [vmem:[#allocation2] sm:$0xf] %vm1305_vm3, %v3090_v24 }
 0x3d7   : > { %v1137_v26 = vpop.f32.mrf.mxu0 }
 0x3d8   : > { %v3091_v29 = vpack.c.bf16 %v1137_v26, %v1137_v26 }
 0x3d9   : > { %v3255_v30 = vpop.f32.mrf.mxu0 }
 0x3da   : > { %1307 = vst.msk [vmem:[#allocation2 + $0x4] sm:$0xf] %vm1305_vm3, %v3091_v29 }
 0x3db   : > { %v1178_v31 = vpop.f32.mrf.mxu1 }
 0x3dc   : > { %v3092_v32 = vpack.c.bf16 %v1178_v31, %v1178_v31 }
 0x3dd   : > { %v3260_v34 = vpop.f32.mrf.mxu1 }
 0x3de   : > { %1308 = vst.msk [vmem:[#allocation2 + $0x8] sm:$0xf] %vm1305_vm3, %v3092_v32 }
 0x3df   : > { %v1181_v35 = vpop.f32.mrf.mxu1 }
 0x3e0   : > { %v3093_v36 = vpack.c.bf16 %v1181_v35, %v1181_v35 }
 0x3e1   : > { %v3261_v37 = vpop.f32.mrf.mxu1 }
 0x3e2   : > { %1309 = vst.msk [vmem:[#allocation2 + $0xc] sm:$0xf] %vm1305_vm3, %v3093_v36 }
 0x3e3   : > { %v1222_v38 = vpop.f32.mrf.mxu0 }
 0x3e4   : > { %v3094_v59 = vpack.c.bf16 %v1222_v38, %v1222_v38 }
 0x3e5   : > { %v3266_v9 = vpop.f32.mrf.mxu0 }
 0x3e6   : > { %1310 = vst.msk [vmem:[#allocation2 + $0x10] sm:$0xf] %vm1305_vm3, %v3094_v59 }
 0x3e7   : > { %v1225_v28 = vpop.f32.mrf.mxu0 }
 0x3e8   : > { %v3095_v49 = vpack.c.bf16 %v1225_v28, %v1225_v28 }
 0x3e9   : > { %v3267_v39 = vpop.f32.mrf.mxu0 }
 0x3ea   : > { %1311 = vst.msk [vmem:[#allocation2 + $0x14] sm:$0xf] %vm1305_vm3, %v3095_v49 }
 0x40a   : > { %v1360_v41 = vpop.f32.mrf.mxu0 }
 0x40b   : > { %v1526_v8 = vmul.f32 0.125, %v1360_v41 }
 0x40c   : > { %v3278_v42 = vpop.f32.mrf.mxu0 }
 0x40d   : > { %v1534_v27 = vadd.f32 %v3907_v60, %v1526_v8 }
 0x40e   : > { %v1363_v43 = vpop.f32.mrf.mxu0 }
 0x40f   : > { %v1527_v50 = vmul.f32 0.125, %v1363_v43  ;;  %v1542_v52 = vsel %vm1004_vm2, %v1534_v27, -inf }
 0x410   : > { %1543 = vmax.xlane.f32.xlu0 %v1542_v52  ;;  %v3279_v44 = vpop.f32.mrf.mxu0 }
 0x411   : > { %v1535_v51 = vadd.f32 %v3907_v60, %v1527_v50 }
 0x412   : > { %v1466_v53 = vpop.f32.mrf.mxu0 }
 0x413   : > { %v1545_v54 = vsel %vm1004_vm2, %v1535_v51, -inf  ;;  %v1530_v15 = vmul.f32 0.125, %v1466_v53 }
 0x414   : > { %1546 = vmax.xlane.f32.xlu1 %v1545_v54  ;;  %v3290_v55 = vpop.f32.mrf.mxu0 }
 0x415   : > { %v1538_v23 = vadd.f32 %v3924_v20, %v1530_v15 }
 0x416   : > { %v1469_v56 = vpop.f32.mrf.mxu0 }
 0x417   : > { %v1531_v58 = vmul.f32 0.125, %v1469_v56  ;;  %v1554_v29 = vsel %vm1004_vm2, %v1538_v23, -inf }
 0x418   : > { %v1266_v61 = vpop.f32.mrf.mxu1  ;;  %v3291_v62 = vpop.f32.mrf.mxu0 }
 0x419   : > { %v3096_v0 = vpack.c.bf16 %v1266_v61, %v1266_v61  ;;  %v1539_v1 = vadd.f32 %v3924_v20, %v1531_v58 }
 0x41a   : > { %v3272_v2 = vpop.f32.mrf.mxu1 }
 0x41b   : > { %1312 = vst.msk [vmem:[#allocation2 + $0x18] sm:$0xf] %vm1305_vm3, %v3096_v0  ;;  %v1557_v3 = vsel %vm1004_vm2, %v1539_v1, -inf }
 0x41c   : > { %1558 = vmax.xlane.f32.xlu1 %v1557_v3  ;;  %v1269_v5 = vpop.f32.mrf.mxu1 }
 0x41d   : > { %v3097_v60 = vpack.c.bf16 %v1269_v5, %v1269_v5 }
 0x41e   : > { %v3273_v7 = vpop.f32.mrf.mxu1 }
 0x41f   : > { %1313 = vst.msk [vmem:[#allocation2 + $0x1c] sm:$0xf] %vm1305_vm3, %v3097_v60 }
 0x420   : > { %v1413_v11 = vpop.f32.mrf.mxu1 }
 0x421   : > { %v1528_v12 = vmul.f32 0.125, %v1413_v11 }
 0x422   : > { %v3284_v63 = vpop.f32.mrf.mxu1 }
 0x423   : > { %v1536_v14 = vadd.f32 %v3915_v6, %v1528_v12 }
 0x424   : > { %v1416_v4 = vpop.f32.mrf.mxu1 }
 0x425   : > { %v1529_v16 = vmul.f32 0.125, %v1416_v4  ;;  %v1548_v13 = vsel %vm1004_vm2, %v1536_v14, -inf }
 0x426   : > { %1549 = vmax.xlane.f32.xlu0 %v1548_v13  ;;  %v3285_v17 = vpop.f32.mrf.mxu1 }
 0x427   : > { %v1537_v18 = vadd.f32 %v3915_v6, %v1529_v16 }
 0x428   : > { %v1519_v19 = vpop.f32.mrf.mxu1 }
 0x429   : > { %v1532_v21 = vmul.f32 0.125, %v1519_v19  ;;  %v1551_v22 = vsel %vm1004_vm2, %v1537_v18, -inf }
 0x42a   : > { %1552 = vmax.xlane.f32.xlu0 %v1551_v22  ;;  %v3296_v24 = vpop.f32.mrf.mxu1 }
 0x42b   : > { %v1540_v30 = vadd.f32 %v3933_v33, %v1532_v21 }
 0x42c   : > { %v1522_v25 = vpop.f32.mrf.mxu1 }
 0x42d   : > { %v1533_v26 = vmul.f32 0.125, %v1522_v25  ;;  %v1560_v6 = vsel %vm1004_vm2, %v1540_v30, -inf }
 0x42e   : > { %1555 = vmax.xlane.f32.xlu0 %v1554_v29  ;;  %v3297_v31 = vpop.f32.mrf.mxu1 }
 0x42f   : > { %v1541_v32 = vadd.f32 %v3933_v33, %v1533_v26 }
 0x431   : > { %v1563_v34 = vsel %vm1004_vm2, %v1541_v32, -inf }
 0x432   : > { %1561 = vmax.xlane.f32.xlu0 %v1560_v6  ;;  %1564 = vmax.xlane.f32.xlu1 %v1563_v34 }
 0x499   : > { %v1544_v35 = vpop.xlane.xlu0 %1543 }
 0x49a   : > { %v1566_v20 = vsub.f32 %v1534_v27, %v1544_v35 }
 0x49c   : > { %v1574_v36 = vmul.f32 1.442695, %v1566_v20 }
 0x49d   : > { %v1547_v37 = vpop.xlane.xlu1 %1546 }
 0x49e   : > { %3508 = vpow2.f32 %v1574_v36  ;;  %v1567_v38 = vsub.f32 %v1535_v51, %v1547_v37 }
 0x4a0   : > { %v1576_v59 = vmul.f32 1.442695, %v1567_v38 }
 0x4a2   : > { %3510 = vpow2.f32 %v1576_v59 }
 0x4a5   : > { %v1559_v49 = vpop.xlane.xlu1 %1558 }
 0x4a6   : > { %v1571_v42 = vsub.f32 %v1539_v1, %v1559_v49 }
 0x4a8   : > { %v1584_v52 = vmul.f32 1.442695, %v1571_v42  ;;  %v3427_v42 = vld [vmem:[%s3704_s10 + $0x20] sm:$0xff]  }
 0x4ab   : > { %v4032_v9 = vpop.eup %3508 }
 0x4ac   : > { %v1590_v28 = vsel %vm1004_vm2, %v4032_v9, 0.0 }
 0x4ad   : > { %1591 = vadd.xlane.f32.xlu0 %v1590_v28 }
 0x4af   : > { %v4036_v33 = vpop.eup %3510  ;;  %v1550_v39 = vpop.xlane.xlu0 %1549 }
 0x4b0   : > { %v1568_v41 = vsub.f32 %v1536_v14, %v1550_v39  ;;  %v1593_v8 = vsel %vm1004_vm2, %v4036_v33, 0.0 }
 0x4b1   : > { %1594 = vadd.xlane.f32.xlu1 %v1593_v8  ;;  %v3426_v8 = vld [vmem:[%s3704_s10 + $0x28] sm:$0xff]  }
 0x4b2   : > { %v1578_v27 = vmul.f32 1.442695, %v1568_v41  ;;  %v3425_v41 = vld [vmem:[%s3704_s10 + $0x30] sm:$0xff]  }
 0x4b3   : > { %v1553_v43 = vpop.xlane.xlu0 %1552 }
 0x4b4   : > { %3512 = vpow2.f32 %v1578_v27  ;;  %v1569_v50 = vsub.f32 %v1537_v18, %v1553_v43  ;;  %v3428_v27 = vld [vmem:[%s3704_s10 + $0x18] sm:$0xff]   ;;  %v3429_v43 = vld [vmem:[%s3704_s10 + $0x10] sm:$0xff]  }
 0x4b6   : > { %v1580_v44 = vmul.f32 1.442695, %v1569_v50  ;;  %v3430_v50 = vld [vmem:[%s3704_s10 + $0x8] sm:$0xff]  }
 0x4b7   : > { %v1556_v51 = vpop.xlane.xlu0 %1555 }
 0x4b8   : > { %3514 = vpow2.f32 %v1580_v44  ;;  %v1570_v53 = vsub.f32 %v1538_v23, %v1556_v51 }
 0x4b9   : > { %3516 = vpow2.f32 %v1584_v52 }
 0x4ba   : > { %v1582_v54 = vmul.f32 1.442695, %v1570_v53  ;;  %v3431_v53 = vld [vmem:[%s3704_s10] sm:$0xff]  }
 0x4bb   : > { %v1562_v55 = vpop.xlane.xlu0 %1561  ;;  %v1565_v12 = vpop.xlane.xlu1 %1564 }
 0x4bc   : > { %3518 = vpow2.f32 %v1582_v54  ;;  %v1572_v56 = vsub.f32 %v1540_v30, %v1562_v55  ;;  %v1573_v63 = vsub.f32 %v1541_v32, %v1565_v12 }
 0x4be   : > { %v1586_v58 = vmul.f32 1.442695, %v1572_v56  ;;  %v1588_v14 = vmul.f32 1.442695, %v1573_v63 }
 0x4c0   : > { %3520 = vpow2.f32 %v1586_v58 }
 0x4c1   : > { %v3513_v61 = vpop.eup %3512  ;;  %3522 = vpow2.f32 %v1588_v14 }
 0x4c2   : > { %v1596_v62 = vsel %vm1004_vm2, %v3513_v61, 0.0 }
 0x4c3   : > { %1597 = vadd.xlane.f32.xlu0 %v1596_v62 }
 0x4c5   : > { %v3515_v0 = vpop.eup %3514 }
 0x4c6   : > { %v1599_v1 = vsel %vm1004_vm2, %v3515_v0, 0.0  ;;  %v3517_v2 = vpop.eup %3516 }
 0x4c7   : > { %1600 = vadd.xlane.f32.xlu1 %v1599_v1  ;;  %v1605_v60 = vsel %vm1004_vm2, %v3517_v2, 0.0 }
 0x4c9   : > { %v3519_v3 = vpop.eup %3518 }
 0x4ca   : > { %v1602_v5 = vsel %vm1004_vm2, %v3519_v3, 0.0 }
 0x4cb   : > { %1603 = vadd.xlane.f32.xlu0 %v1602_v5  ;;  %1606 = vadd.xlane.f32.xlu1 %v1605_v60 }
 0x4cd   : > { %v3521_v7 = vpop.eup %3520 }
 0x4ce   : > { %v1608_v11 = vsel %vm1004_vm2, %v3521_v7, 0.0  ;;  %v3523_v4 = vpop.eup %3522 }
 0x4cf   : > { %1609 = vadd.xlane.f32.xlu0 %v1608_v11  ;;  %v1611_v15 = vsel %vm1004_vm2, %v3523_v4, 0.0 }
 0x4dc   : > { %1683 = vrot.lane.b32.xlu1 %v3896_v57, %s3642_s24 }
 0x4e0   : > { %1731 = vrot.lane.b32.xlu1 %v3877_v46, %s3642_s24 }
 0x4e5   : > { %1635 = vrot.lane.b32.xlu0 %v3879_v48, %s3642_s24 }
 0x504   : > { %1612 = vadd.xlane.f32.xlu1 %v1611_v15 }
 0x515   : > { %1779 = vrot.lane.b32.xlu1 %v3873_v40, %s3642_s24 }
 0x536   : > { %v1592_v13 = vpop.xlane.xlu0 %1591 }
 0x53a   : > { %v1595_v16 = vpop.xlane.xlu1 %1594 }
 0x53b   : > { %3524 = vrcp.f32 %v1595_v16 }
 0x53c   : > { %3526 = vrcp.f32 %v1592_v13 }
 0x548   : > { %v3525_v18 = vpop.eup %3524 }
 0x549   : > { %v3527_v22 = vpop.eup %3526  ;;  %v1617_v23 = vmul.f32 %v3525_v18, %v4036_v33 }
 0x54a   : > { %v1615_v25 = vmul.f32 %v3527_v22, %v4032_v9 }
 0x54c   : > { %v1598_v57 = vpop.xlane.xlu0 %1597  ;;  %v1630_v29 = vpack.c.bf16 %v1617_v23, %v1615_v25 }
 0x54d   : > { %3528 = vrcp.f32 %v1598_v57 }
 0x550   : > { %v1601_v46 = vpop.xlane.xlu1 %1600 }
 0x551   : > { %3530 = vrcp.f32 %v1601_v46 }
 0x554   : > { %v1604_v48 = vpop.xlane.xlu0 %1603  ;;  %v1607_v17 = vpop.xlane.xlu1 %1606 }
 0x555   : > { %3532 = vrcp.f32 %v1604_v48 }
 0x556   : > { %3534 = vrcp.f32 %v1607_v17 }
 0x558   : > { %v1610_v19 = vpop.xlane.xlu0 %1609  ;;  %v1684_v21 = vpop.permute.xlu1 %1683 }
 0x559   : > { %3305 = vmatpush3.bf16.msra.mxu1 %v1684_v21  ;;  %3536 = vrcp.f32 %v1610_v19 }
 0x55a   : > { %3316 = vmatprep.subr.bf16.mxu1 %v3640_v45  ;;  %v3529_v40 = vpop.eup %3528 }
 0x55b   : > { %v1619_v30 = vmul.f32 %v3529_v40, %v3513_v61 }
 0x55c   : > { %v1636_v24 = vpop.permute.xlu0 %1635  ;;  %v1732_v32 = vpop.permute.xlu1 %1731 }
 0x55d   : > { %3299 = vmatpush3.bf16.msra.mxu0 %v1636_v24 }
 0x55e   : > { %v3531_v26 = vpop.eup %3530  ;;  %3310 = vmatprep.subr.bf16.mxu0 %v3640_v45 }
 0x55f   : > { %v1621_v31 = vmul.f32 %v3531_v26, %v3515_v0  ;;  %v1909_v26 = vsub.s32 1, %v3832_v47 }
 0x560   : > { %3301 = vmatmul.mubr.msk.bf16.vlgmr.msra.gmra.mxu0 %vm1004_vm2, %v1630_v29 }
 0x561   : > { %3311 = vmatpush3.bf16.msra.mxu0 %v1732_v32  ;;  %v1631_v6 = vpack.c.bf16 %v1621_v31, %v1619_v30  ;;  %3312 = vmatprep.mubr.msk.bf16.mxu0 %vm3641_vm0, %v3640_v45  ;;  %v4093_v30 = vld [vmem:[%s3724_s30] sm:$0xff] }
 0x562   : > { %v3533_v34 = vpop.eup %3532  ;;  %v1910_v31 = vrot.slane %v4093_v30, %v1909_v26  ;;  %v3451_v26 = vld [vmem:[%s3714_s17 + $0x20] ss:$8 sps:$4 sm:$0xff]  }
 0x563   : > { %v3535_v35 = vpop.eup %3534  ;;  %3307 = vmatmul.mubr.msk.bf16.vlgmr.msra.gmra.mxu1 %vm1004_vm2, %v1631_v6  ;;  %v1623_v20 = vmul.f32 %v3533_v34, %v3519_v3 }
 0x564   : > { %v1625_v36 = vmul.f32 %v3535_v35, %v3517_v2  ;;  %3318 = vmatprep.mubr.msk.bf16.mxu1 %vm3641_vm0, %v3640_v45  ;;  %v3424_v45 = vld [vmem:[%s3704_s10 + $0x38] sm:$0xff]  }
 0x565   : > { %3322 = vmatprep.subr.bf16.mxu0 %v3424_v45 }
 0x566   : > { %v1632_v37 = vpack.c.bf16 %v1625_v36, %v1623_v20  ;;  %v3537_v9 = vpop.eup %3536  ;;  %v3605_v20 = vld [vmem:[%s4391_s7] sm:$0xff] }
 0x567   : > { %v1627_v33 = vmul.f32 %v3537_v9, %v3521_v7  ;;  %v3606_v9 = vld [vmem:[%s4391_s7 + $0x10] sm:$0xff] }
 0x568   : > { %3313 = vmatmul.mubr.msk.bf16.vlgmr.msra.gmra.mxu0 %vm1004_vm2, %v1632_v37 }
 0x569   : > { %3323 = vmatpush3.bf16.msra.mxu0 %v3424_v45 }
 0x56a   : > { %3324 = vmatprep.subr.bf16.mxu0 %v3425_v41 }
 0x56d   : > { %3325 = vmatpush3.bf16.msra.mxu0 %v3425_v41 }
 0x56e   : > { %3326 = vmatprep.subr.bf16.mxu0 %v3426_v8 }
 0x571   : > { %3327 = vmatpush3.bf16.msra.mxu0 %v3426_v8 }
 0x572   : > { %3328 = vmatprep.subr.bf16.mxu0 %v3427_v42 }
 0x575   : > { %3329 = vmatpush3.bf16.msra.mxu0 %v3427_v42 }
 0x576   : > { %3330 = vmatprep.subr.bf16.mxu0 %v3428_v27 }
 0x579   : > { %3331 = vmatpush3.bf16.msra.mxu0 %v3428_v27 }
 0x57a   : > { %3332 = vmatprep.subr.bf16.mxu0 %v3429_v43 }
 0x57d   : > { %3333 = vmatpush3.bf16.msra.mxu0 %v3429_v43 }
 0x57e   : > { %3334 = vmatprep.subr.bf16.mxu0 %v3430_v50 }
 0x581   : > { %3335 = vmatpush3.bf16.msra.mxu0 %v3430_v50  ;;  %v3609_v50 = vld [vmem:[%s4391_s7 + $0x20] sm:$0xff] }
 0x582   : > { %3336 = vmatprep.subr.bf16.mxu0 %v3431_v53 }
 0x585   : > { %3337 = vmatpush3.bf16.msra.mxu0 %v3431_v53 }
 0x58d   : > { %v1613_v38 = vpop.xlane.xlu1 %1612 }
 0x58e   : > { %3538 = vrcp.f32 %v1613_v38 }
 0x591   : > { %v1780_v59 = vpop.permute.xlu1 %1779 }
 0x592   : > { %3317 = vmatpush3.bf16.msra.mxu1 %v1780_v59 }
 0x59b   : > { %v3539_v28 = vpop.eup %3538 }
 0x59c   : > { %v1629_v49 = vmul.f32 %v3539_v28, %v3523_v4 }
 0x59e   : > { %v1633_v39 = vpack.c.bf16 %v1629_v49, %v1627_v33  ;;  %v3607_v33 = vld [vmem:[%s4391_s7 + $0x8] sm:$0xff] }
 0x5a0   : > { %3319 = vmatmul.mubr.msk.bf16.vlgmr.msra.gmra.mxu1 %vm1004_vm2, %v1633_v39  ;;  %v3608_v39 = vld [vmem:[%s4391_s7 + $0x18] sm:$0xff] }
 0x5a1   : > { %2309 = vmatprep.mubr.bf16.mxu1 %v3639_v10 }
 0x620   : > { %v1675_v52 = vpop.f32.mrf.mxu0 }
 0x621   : > { %v3098_v44 = vpack.c.bf16 %v1675_v52, %v1675_v52 }
 0x622   : > { %v3302_v51 = vpop.f32.mrf.mxu0 }
 0x623   : > { %1850 = vrot.lane.b32.xlu0 %v3098_v44, %s3642_s24  ;;  %v1723_v54 = vpop.f32.mrf.mxu1 }
 0x624   : > { %v3100_v55 = vpack.c.bf16 %v1723_v54, %v1723_v54  ;;  %v1678_v56 = vpop.f32.mrf.mxu0  ;;  %v3610_v54 = vld [vmem:[%s4391_s7 + $0x28] sm:$0xff] }
 0x625   : > { %v3099_v58 = vpack.c.bf16 %v1678_v56, %v1678_v56  ;;  %v3308_v61 = vpop.f32.mrf.mxu1  ;;  %v3611_v56 = vld [vmem:[%s4391_s7 + $0x30] sm:$0xff] }
 0x626   : > { %v3303_v62 = vpop.f32.mrf.mxu0  ;;  %v3612_v61 = vld [vmem:[%s4391_s7 + $0x38] sm:$0xff] }
 0x627   : > { %1852 = vrot.lane.b32.xlu1 %v3099_v58, %s3642_s24  ;;  %1854 = vrot.lane.b32.xlu0 %v3100_v55, %s3642_s24  ;;  %v1726_v0 = vpop.f32.mrf.mxu1 }
 0x628   : > { %v3101_v1 = vpack.c.bf16 %v1726_v0, %v1726_v0  ;;  %v1771_v2 = vpop.f32.mrf.mxu0  ;;  %v3436_v0 = vld [vmem:[%s3714_s17 + $0x70] ss:$8 sps:$4 sm:$0xff]  }
 0x629   : > { %v3102_v3 = vpack.c.bf16 %v1771_v2, %v1771_v2  ;;  %v3309_v5 = vpop.f32.mrf.mxu1 }
 0x62a   : > { %v3314_v60 = vpop.f32.mrf.mxu0 }
 0x62b   : > { %1858 = vrot.lane.b32.xlu0 %v3102_v3, %s3642_s24  ;;  %1856 = vrot.lane.b32.xlu1 %v3101_v1, %s3642_s24  ;;  %v3438_v1 = vld [vmem:[%s3714_s17 + $0x74] ss:$8 sps:$4 sm:$0xff]  }
 0x62c   : > { %v1774_v7 = vpop.f32.mrf.mxu0  ;;  %2277 = vmatprep.subr.bf16.mxu1 %v3438_v1 }
 0x62d   : > { %v3103_v11 = vpack.c.bf16 %v1774_v7, %v1774_v7  ;;  %2278 = vmatpush1.bf16.msra.mxu1 %v3436_v0 }
 0x62e   : > { %v3315_v12 = vpop.f32.mrf.mxu0 }
 0x62f   : > { %1860 = vrot.lane.b32.xlu1 %v3103_v11, %s3642_s24 }
 0x660   : > { %v1819_v63 = vpop.f32.mrf.mxu1 }
 0x661   : > { %v3104_v14 = vpack.c.bf16 %v1819_v63, %v1819_v63 }
 0x662   : > { %v3320_v4 = vpop.f32.mrf.mxu1 }
 0x663   : > { %1862 = vrot.lane.b32.xlu0 %v3104_v14, %s3642_s24 }
 0x664   : > { %v1822_v15 = vpop.f32.mrf.mxu1 }
 0x665   : > { %v3105_v16 = vpack.c.bf16 %v1822_v15, %v1822_v15 }
 0x666   : > { %v3321_v13 = vpop.f32.mrf.mxu1 }
 0x667   : > { %1864 = vrot.lane.b32.xlu1 %v3105_v16, %s3642_s24 }
 0x695   : > { %v1851_v57 = vpop.permute.xlu0 %1850 }
 0x696   : > { %1875 = vst.msk [vmem:[#allocation2] sm:$0xf] %vm1874_vm4, %v1851_v57 }
 0x699   : > { %v1853_v46 = vpop.permute.xlu1 %1852  ;;  %v1855_v48 = vpop.permute.xlu0 %1854 }
 0x69a   : > { %1876 = vst.msk [vmem:[#allocation2 + $0x4] sm:$0xf] %vm1874_vm4, %v1853_v46  ;;  %1877 = vst.msk [vmem:[#allocation2 + $0x8] sm:$0xf] %vm1874_vm4, %v1855_v48 }
 0x69d   : > { %v1859_v17 = vpop.permute.xlu0 %1858  ;;  %v1857_v18 = vpop.permute.xlu1 %1856 }
 0x69e   : > { %1879 = vst.msk [vmem:[#allocation2 + $0x10] sm:$0xf] %vm1874_vm4, %v1859_v17  ;;  %1878 = vst.msk [vmem:[#allocation2 + $0xc] sm:$0xf] %vm1874_vm4, %v1857_v18  ;;  %v3441_v17 = vld [vmem:[%s3714_s17 + $0x64] ss:$8 sps:$4 sm:$0xff]  }
 0x69f   : > { %v3439_v18 = vld [vmem:[%s3714_s17 + $0x60] ss:$8 sps:$4 sm:$0xff]   ;;  %2279 = vmatprep.subr.bf16.mxu1 %v3441_v17 }
 0x6a0   : > { %2280 = vmatpush1.bf16.msra.mxu1 %v3439_v18 }
 0x6a1   : > { %v1861_v19 = vpop.permute.xlu1 %1860  ;;  %v3432_v21 = vld [vmem:[#allocation2] sm:$0xff]  }
 0x6a2   : > { %1880 = vst.msk [vmem:[#allocation2 + $0x14] sm:$0xf] %vm1874_vm4, %v1861_v19  ;;  %3338 = vmatprep.mubr.bf16.mxu0 %v3432_v21  ;;  %v3444_v19 = vld [vmem:[%s3714_s17 + $0x54] ss:$8 sps:$4 sm:$0xff]   ;;  %v3442_v21 = vld [vmem:[%s3714_s17 + $0x50] ss:$8 sps:$4 sm:$0xff]  }
 0x6a3   : > { %2281 = vmatprep.subr.bf16.mxu1 %v3444_v19 }
 0x6a4   : > { %2282 = vmatpush1.bf16.msra.mxu1 %v3442_v21 }
 0x6a5   : > { %v3433_v22 = vld [vmem:[#allocation2 + $0x8] sm:$0xff]  }
 0x6a6   : > { %3339 = vmatmul.mubr.bf16.vlgmr.msra.gmra.mxu0 %v3433_v22  ;;  %v3447_v22 = vld [vmem:[%s3714_s17 + $0x44] ss:$8 sps:$4 sm:$0xff]  }
 0x6a7   : > { %2283 = vmatprep.subr.bf16.mxu1 %v3447_v22 }
 0x6a9   : > { %v3434_v23 = vld [vmem:[#allocation2 + $0x10] sm:$0xff]  }
 0x6aa   : > { %3342 = vmatprep.mubr.bf16.mxu0 %v3434_v23  ;;  %v3445_v23 = vld [vmem:[%s3714_s17 + $0x40] ss:$8 sps:$4 sm:$0xff]  }
 0x6ab   : > { %2284 = vmatpush1.bf16.msra.mxu1 %v3445_v23 }
 0x6d5   : > { %v1863_v40 = vpop.permute.xlu0 %1862 }
 0x6d6   : > { %1881 = vst.msk [vmem:[#allocation2 + $0x18] sm:$0xf] %vm1874_vm4, %v1863_v40  ;;  %v3448_v40 = vld [vmem:[%s3714_s17 + $0x30] ss:$8 sps:$4 sm:$0xff]  }
 0x6d9   : > { %v1865_v24 = vpop.permute.xlu1 %1864 }
 0x6da   : > { %1882 = vst.msk [vmem:[#allocation2 + $0x1c] sm:$0xf] %vm1874_vm4, %v1865_v24  ;;  %v3450_v24 = vld [vmem:[%s3714_s17 + $0x34] ss:$8 sps:$4 sm:$0xff]  }
 0x6db   : > { %2285 = vmatprep.subr.bf16.mxu1 %v3450_v24 }
 0x6dc   : > { %2286 = vmatpush1.bf16.msra.mxu1 %v3448_v40 }
 0x6e1   : > { %v3435_v25 = vld [vmem:[#allocation2 + $0x18] sm:$0xff]  }
 0x6e2   : > { %3343 = vmatmul.mubr.bf16.gmra.mxu0 %v3435_v25  ;;  %v3453_v25 = vld [vmem:[%s3714_s17 + $0x24] ss:$8 sps:$4 sm:$0xff]  }
 0x6e3   : > { %2287 = vmatprep.subr.bf16.mxu1 %v3453_v25 }
 0x6e4   : > { %2288 = vmatpush1.bf16.msra.mxu1 %v3451_v26 }
 0x766   : > { %v3340_v29 = vpop.f32.mrf.mxu0 }
 0x767   : > { %v2026_v35 = vadd.f32 %v3340_v29, %v1910_v31  ;;  %v3456_v29 = vld [vmem:[%s3714_s17 + $0x14] ss:$8 sps:$4 sm:$0xff]  }
 0x768   : > { %v2017_v32 = vpop.f32.mrf.mxu0  ;;  %2289 = vmatprep.subr.bf16.mxu1 %v3456_v29 }
 0x769   : > { %v2018_v6 = vadd.f32 %v2017_v32, %v1910_v31  ;;  %v2050_v28 = vadd.f32 %v3606_v9, %v2026_v35  ;;  %v3459_v32 = vld [vmem:[%s3714_s17 + $0x4] ss:$8 sps:$4 sm:$0xff]  }
 0x76a   : > { %v3341_v34 = vpop.f32.mrf.mxu0 }
 0x76b   : > { %v2048_v36 = vadd.f32 %v3605_v20, %v2018_v6  ;;  %v2029_v59 = vadd.f32 %v3341_v34, %v1910_v31  ;;  %v3457_v6 = vld [vmem:[%s3714_s17] ss:$8 sps:$4 sm:$0xff]  }
 0x76c   : > { %v2020_v37 = vpop.f32.mrf.mxu0 }
 0x76d   : > { %v2021_v38 = vadd.f32 %v2020_v37, %v1910_v31  ;;  %2056 = vadd.xlane.f32.xlu0 %v2048_v36  ;;  %v2051_v45 = vadd.f32 %v3608_v39, %v2029_v59 }
 0x76f   : > { %v2049_v49 = vadd.f32 %v3607_v33, %v2021_v38 }
 0x771   : > { %2060 = vadd.xlane.f32.xlu0 %v2050_v28  ;;  %2058 = vadd.xlane.f32.xlu1 %v2049_v49 }
 0x775   : > { %2062 = vadd.xlane.f32.xlu0 %v2051_v45 }
 0x7a2   : > { %v3344_v41 = vpop.f32.mrf.mxu0 }
 0x7a3   : > { %v2042_v43 = vadd.f32 %v3344_v41, %v1910_v31 }
 0x7a4   : > { %v2033_v8 = vpop.f32.mrf.mxu0 }
 0x7a5   : > { %v2034_v42 = vadd.f32 %v2033_v8, %v1910_v31  ;;  %v4122_v58 = vadd.f32 %v3611_v56, %v2042_v43 }
 0x7a6   : > { %v3345_v27 = vpop.f32.mrf.mxu0 }
 0x7a7   : > { %v4111_v52 = vadd.f32 %v3609_v50, %v2034_v42  ;;  %v2045_v53 = vadd.f32 %v3345_v27, %v1910_v31 }
 0x7a8   : > { %v2036_v44 = vpop.f32.mrf.mxu0 }
 0x7a9   : > { %v2037_v51 = vadd.f32 %v2036_v44, %v1910_v31  ;;  %2064 = vadd.xlane.f32.xlu0 %v4111_v52  ;;  %v4129_v62 = vadd.f32 %v3612_v61, %v2045_v53  ;;  %v3454_v31 = vld [vmem:[%s3714_s17 + $0x10] ss:$8 sps:$4 sm:$0xff]  }
 0x7aa   : > { %2290 = vmatpush1.bf16.msra.mxu1 %v3454_v31 }
 0x7ab   : > { %v4117_v55 = vadd.f32 %v3610_v54, %v2037_v51  ;;  %2291 = vmatprep.subr.bf16.mxu1 %v3459_v32 }
 0x7ad   : > { %2066 = vadd.xlane.f32.xlu1 %v4117_v55  ;;  %2068 = vadd.xlane.f32.xlu0 %v4122_v58 }
 0x7ae   : > { %2292 = vmatpush1.bf16.msra.mxu1 %v3457_v6 }
 0x7b1   : > { %2070 = vadd.xlane.f32.xlu1 %v4129_v62 }
 0x7f6   : > { %v2057_v2 = vpop.xlane.xlu0 %2056 }
 0x7f7   : > { %v2073_v3 = vmul.f32 0.0078125, %v2057_v2 }
 0x7f9   : > { %v4134_v5 = vsub.f32 %v2048_v36, %v2073_v3  ;;  %v2159_v3 = vsub.s32 5, %v3832_v47 }
 0x7fa   : > { %v2061_v60 = vpop.xlane.xlu0 %2060  ;;  %v2059_v7 = vpop.xlane.xlu1 %2058 }
 0x7fb   : > { %v2075_v11 = vmul.f32 0.0078125, %v2061_v60  ;;  %v2074_v12 = vmul.f32 0.0078125, %v2059_v7  ;;  %v2089_v63 = vmul.f32 %v4134_v5, %v4134_v5 }
 0x7fd   : > { %v4138_v14 = vsub.f32 %v2050_v28, %v2075_v11  ;;  %v4140_v4 = vsub.f32 %v2049_v49, %v2074_v12  ;;  %2097 = vadd.xlane.f32.xlu0 %v2089_v63  ;;  %v2160_v12 = vrot.slane %v4093_v30, %v2159_v3  ;;  %v3474_v3 = vld [vmem:[%s3719_s20 + $0x40] sm:$0xff]  }
 0x7fe   : > { %v2063_v15 = vpop.xlane.xlu0 %2062 }
 0x7ff   : > { %v2076_v16 = vmul.f32 0.0078125, %v2063_v15  ;;  %v2091_v13 = vmul.f32 %v4138_v14, %v4138_v14  ;;  %v2090_v57 = vmul.f32 %v4140_v4, %v4140_v4 }
 0x801   : > { %v4146_v46 = vsub.f32 %v2051_v45, %v2076_v16  ;;  %2101 = vadd.xlane.f32.xlu0 %v2091_v13  ;;  %2099 = vadd.xlane.f32.xlu1 %v2090_v57 }
 0x803   : > { %v2092_v48 = vmul.f32 %v4146_v46, %v4146_v46 }
 0x805   : > { %2103 = vadd.xlane.f32.xlu1 %v2092_v48 }
 0x832   : > { %v2065_v34 = vpop.xlane.xlu0 %2064 }
 0x833   : > { %v2077_v35 = vmul.f32 0.0078125, %v2065_v34 }
 0x835   : > { %v4165_v20 = vsub.f32 %v4111_v52, %v2077_v35 }
 0x836   : > { %v2069_v36 = vpop.xlane.xlu0 %2068  ;;  %v2067_v37 = vpop.xlane.xlu1 %2066 }
 0x837   : > { %v2079_v38 = vmul.f32 0.0078125, %v2069_v36  ;;  %v2078_v59 = vmul.f32 0.0078125, %v2067_v37  ;;  %v2093_v9 = vmul.f32 %v4165_v20, %v4165_v20 }
 0x839   : > { %v4170_v28 = vsub.f32 %v4122_v58, %v2079_v38  ;;  %v4173_v33 = vsub.f32 %v4117_v55, %v2078_v59  ;;  %2105 = vadd.xlane.f32.xlu0 %v2093_v9 }
 0x83a   : > { %v2071_v49 = vpop.xlane.xlu1 %2070 }
 0x83b   : > { %v2080_v39 = vmul.f32 0.0078125, %v2071_v49  ;;  %v2095_v45 = vmul.f32 %v4170_v28, %v4170_v28  ;;  %v2094_v41 = vmul.f32 %v4173_v33, %v4173_v33 }
 0x83d   : > { %v4180_v8 = vsub.f32 %v4129_v62, %v2080_v39  ;;  %2109 = vadd.xlane.f32.xlu0 %v2095_v45  ;;  %2107 = vadd.xlane.f32.xlu1 %v2094_v41  ;;  %v2147_v62 = vsub.s32 4, %v3832_v47 }
 0x83f   : > { %v2096_v42 = vmul.f32 %v4180_v8, %v4180_v8  ;;  %v2148_v2 = vrot.slane %v4093_v30, %v2147_v62  ;;  %v3470_v62 = vld [vmem:[%s3719_s20 + $0x50] sm:$0xff]  }
 0x841   : > { %2111 = vadd.xlane.f32.xlu1 %v2096_v42 }
 0x886   : > { %v2098_v27 = vpop.xlane.xlu0 %2097 }
 0x887   : > { %v2113_v43 = vmul.f32 0.0078125, %v2098_v27 }
 0x889   : > { %v2121_v50 = vadd.f32 1e-12, %v2113_v43 }
 0x88a   : > { %v2102_v52 = vpop.xlane.xlu0 %2101  ;;  %v2100_v44 = vpop.xlane.xlu1 %2099 }
 0x88b   : > { %3540 = vrsqrt.f32 %v2121_v50  ;;  %v2115_v51 = vmul.f32 0.0078125, %v2102_v52  ;;  %v2114_v53 = vmul.f32 0.0078125, %v2100_v44  ;;  %v3461_v44 = vld [vmem:[%s3719_s20 + $0x38] sm:$0xff]  }
 0x88d   : > { %v2122_v54 = vadd.f32 1e-12, %v2114_v53  ;;  %v2123_v55 = vadd.f32 1e-12, %v2115_v51  ;;  %v3463_v51 = vld [vmem:[%s3719_s20 + $0x30] sm:$0xff]   ;;  %v3464_v53 = vld [vmem:[%s3719_s20 + $0x68] sm:$0xff]  }
 0x88e   : > { %v2104_v56 = vpop.xlane.xlu1 %2103 }
 0x88f   : > { %v2116_v58 = vmul.f32 0.0078125, %v2104_v56  ;;  %3542 = vrsqrt.f32 %v2122_v54  ;;  %v3465_v54 = vld [vmem:[%s3719_s20 + $0x28] sm:$0xff]   ;;  %v3467_v56 = vld [vmem:[%s3719_s20 + $0x20] sm:$0xff]  }
 0x890   : > { %3544 = vrsqrt.f32 %v2123_v55  ;;  %v3466_v55 = vld [vmem:[%s3719_s20 + $0x60] sm:$0xff]  }
 0x891   : > { %v2124_v61 = vadd.f32 1e-12, %v2116_v58  ;;  %v3468_v58 = vld [vmem:[%s3719_s20 + $0x58] sm:$0xff]  }
 0x893   : > { %3546 = vrsqrt.f32 %v2124_v61  ;;  %v3469_v61 = vld [vmem:[%s3719_s20 + $0x18] sm:$0xff]  }
 0x898   : > { %v3541_v0 = vpop.eup %3540 }
 0x899   : > { %v2137_v1 = vmul.f32 %v3541_v0, %v4134_v5  ;;  %v3471_v0 = vld [vmem:[%s3719_s20 + $0x10] sm:$0xff]  }
 0x89b   : > { %v2149_v11 = vmul.f32 %v2148_v2, %v2137_v1  ;;  %v3472_v1 = vld [vmem:[%s3719_s20 + $0x48] sm:$0xff]  }
 0x89c   : > { %v3543_v60 = vpop.eup %3542 }
 0x89d   : > { %v2138_v7 = vmul.f32 %v3543_v60, %v4140_v4  ;;  %v3545_v63 = vpop.eup %3544  ;;  %v4191_v57 = vadd.f32 %v2160_v12, %v2149_v11  ;;  %v3475_v60 = vld [vmem:[%s3719_s20] sm:$0xff]  }
 0x89e   : > { %v2139_v5 = vmul.f32 %v3545_v63, %v4138_v14 }
 0x89f   : > { %v2150_v16 = vmul.f32 %v2148_v2, %v2138_v7  ;;  %v2191_v7 = vsub.s32 2, %v3832_v47 }
 0x8a0   : > { %v3547_v15 = vpop.eup %3546  ;;  %v2151_v4 = vmul.f32 %v2148_v2, %v2139_v5 }
 0x8a1   : > { %v2140_v13 = vmul.f32 %v3547_v15, %v4146_v46  ;;  %v4193_v48 = vadd.f32 %v2160_v12, %v2150_v16  ;;  %v4241_v11 = vrot.slane %v4093_v30, %v2191_v7 }
 0x8a2   : > { %v4201_v21 = vadd.f32 %v2160_v12, %v2151_v4 }
 0x8a3   : > { %v2169_v17 = vpack.c.bf16 %v4193_v48, %v4191_v57  ;;  %v2152_v18 = vmul.f32 %v2148_v2, %v2140_v13 }
 0x8a5   : > { %2310 = vmatmul.mubr.bf16.vlgmr.msra.gmra.mxu1 %v2169_v17  ;;  %v4199_v19 = vadd.f32 %v2160_v12, %v2152_v18 }
 0x8a6   : > { %2319 = vmatprep.mubr.bf16.mxu1 %v3639_v10 }
 0x8a7   : > { %v2170_v46 = vpack.c.bf16 %v4199_v19, %v4201_v21 }
 0x8ad   : > { %2320 = vmatmul.mubr.bf16.gmra.mxu1 %v2170_v46 }
 0x8ae   : > { %2329 = vmatprep.mubr.bf16.mxu1 %v3639_v10 }
 0x8c2   : > { %v2106_v22 = vpop.xlane.xlu0 %2105 }
 0x8c3   : > { %v2117_v14 = vmul.f32 0.0078125, %v2106_v22 }
 0x8c5   : > { %v2125_v23 = vadd.f32 1e-12, %v2117_v14 }
 0x8c6   : > { %v2110_v40 = vpop.xlane.xlu0 %2109  ;;  %v2108_v24 = vpop.xlane.xlu1 %2107 }
 0x8c7   : > { %3548 = vrsqrt.f32 %v2125_v23  ;;  %v2119_v25 = vmul.f32 0.0078125, %v2110_v40  ;;  %v2118_v26 = vmul.f32 0.0078125, %v2108_v24 }
 0x8c9   : > { %v2126_v29 = vadd.f32 1e-12, %v2118_v26  ;;  %v2127_v31 = vadd.f32 1e-12, %v2119_v25 }
 0x8ca   : > { %v2112_v32 = vpop.xlane.xlu1 %2111 }
 0x8cb   : > { %v2120_v6 = vmul.f32 0.0078125, %v2112_v32  ;;  %3550 = vrsqrt.f32 %v2126_v29 }
 0x8cc   : > { %3552 = vrsqrt.f32 %v2127_v31 }
 0x8cd   : > { %v2128_v34 = vadd.f32 1e-12, %v2120_v6 }
 0x8cf   : > { %3554 = vrsqrt.f32 %v2128_v34 }
 0x8d4   : > { %v3549_v35 = vpop.eup %3548 }
 0x8d5   : > { %v2141_v36 = vmul.f32 %v3549_v35, %v4165_v20 }
 0x8d7   : > { %v2153_v59 = vmul.f32 %v2148_v2, %v2141_v36 }
 0x8d8   : > { %v3551_v37 = vpop.eup %3550 }
 0x8d9   : > { %v2142_v38 = vmul.f32 %v3551_v37, %v4173_v33  ;;  %v3553_v9 = vpop.eup %3552  ;;  %v4209_v41 = vadd.f32 %v2160_v12, %v2153_v59 }
 0x8da   : > { %v2143_v27 = vmul.f32 %v3553_v9, %v4170_v28  ;;  %v3460_v28 = vld [vmem:[%s3719_s20 + $0x78] sm:$0xff]  }
 0x8db   : > { %v2154_v39 = vmul.f32 %v2148_v2, %v2142_v38  ;;  %3162 = vmatprep.subr.bf16.mxu0 %v3460_v28  ;;  %3346 = vmatprep.subr.bf16.mxu1 %v3460_v28 }
 0x8dc   : > { %v3555_v49 = vpop.eup %3554  ;;  %v2155_v43 = vmul.f32 %v2148_v2, %v2143_v27  ;;  %3163 = vmatpush3.bf16.msra.mxu0 %v3461_v44  ;;  %3354 = vmatpush3.bf16.msra.mxu1 %v3461_v44 }
 0x8dd   : > { %v2144_v45 = vmul.f32 %v3555_v49, %v4180_v8  ;;  %v4211_v42 = vadd.f32 %v2160_v12, %v2154_v39 }
 0x8de   : > { %v4219_v8 = vadd.f32 %v2160_v12, %v2155_v43 }
 0x8df   : > { %v2171_v20 = vpack.c.bf16 %v4211_v42, %v4209_v41  ;;  %v2156_v33 = vmul.f32 %v2148_v2, %v2144_v45  ;;  %v3473_v2 = vld [vmem:[%s3719_s20 + $0x8] sm:$0xff]  }
 0x8e1   : > { %2330 = vmatmul.mubr.bf16.gmra.mxu1 %v2171_v20  ;;  %v4217_v50 = vadd.f32 %v2160_v12, %v2156_v33  ;;  %v3613_v12 = vld [vmem:[%s3724_s30 + $0x8] sm:$0xff] }
 0x8e2   : > { %2339 = vmatprep.mubr.bf16.mxu1 %v3639_v10  ;;  %v3462_v10 = vld [vmem:[%s3719_s20 + $0x70] sm:$0xff]   ;;  %v4244_v63 = vrot.slane %v3613_v12, %v2191_v7 }
 0x8e3   : > { %v2172_v52 = vpack.c.bf16 %v4217_v50, %v4219_v8  ;;  %3164 = vmatprep.subr.bf16.mxu0 %v3462_v10  ;;  %3347 = vmatprep.subr.bf16.mxu1 %v3462_v10 }
 0x8e4   : > { %3165 = vmatpush3.bf16.msra.mxu0 %v3463_v51  ;;  %3355 = vmatpush3.bf16.msra.mxu1 %v3463_v51 }
 0x8e5   : > { %3166 = vmatprep.subr.bf16.mxu0 %v3464_v53  ;;  %3348 = vmatprep.subr.bf16.mxu1 %v3464_v53 }
 0x8e8   : > { %3167 = vmatpush3.bf16.msra.mxu0 %v3465_v54  ;;  %3356 = vmatpush3.bf16.msra.mxu1 %v3465_v54 }
 0x8e9   : > { %2340 = vmatmul.mubr.bf16.gmra.mxu1 %v2172_v52  ;;  %3168 = vmatprep.subr.bf16.mxu0 %v3466_v55 }
 0x8ea   : > { %3349 = vmatprep.subr.bf16.mxu1 %v3466_v55 }
 0x8ec   : > { %3169 = vmatpush3.bf16.msra.mxu0 %v3467_v56  ;;  %3357 = vmatpush3.bf16.msra.mxu1 %v3467_v56 }
 0x8ed   : > { %3170 = vmatprep.subr.bf16.mxu0 %v3468_v58  ;;  %3350 = vmatprep.subr.bf16.mxu1 %v3468_v58 }
 0x8f0   : > { %3171 = vmatpush3.bf16.msra.mxu0 %v3469_v61  ;;  %3358 = vmatpush3.bf16.msra.mxu1 %v3469_v61 }
 0x8f1   : > { %3172 = vmatprep.subr.bf16.mxu0 %v3470_v62  ;;  %3351 = vmatprep.subr.bf16.mxu1 %v3470_v62 }
 0x8f4   : > { %3173 = vmatpush3.bf16.msra.mxu0 %v3471_v0  ;;  %3359 = vmatpush3.bf16.msra.mxu1 %v3471_v0 }
 0x8f5   : > { %3174 = vmatprep.subr.bf16.mxu0 %v3472_v1  ;;  %3352 = vmatprep.subr.bf16.mxu1 %v3472_v1 }
 0x8f8   : > { %3175 = vmatpush3.bf16.msra.mxu0 %v3473_v2  ;;  %3360 = vmatpush3.bf16.msra.mxu1 %v3473_v2 }
 0x8f9   : > { %3176 = vmatprep.subr.bf16.mxu0 %v3474_v3  ;;  %3353 = vmatprep.subr.bf16.mxu1 %v3474_v3 }
 0x8fc   : > { %3177 = vmatpush3.bf16.msra.mxu0 %v3475_v60  ;;  %3361 = vmatpush3.bf16.msra.mxu1 %v3475_v60 }
 0x965   : > { %v2311_v15 = vpop.f32.mrf.mxu1 }
 0x966   : > { %v4247_v16 = vadd.f32 %v2311_v15, %v4241_v11 }
 0x967   : > { %v2313_v13 = vpop.f32.mrf.mxu1 }
 0x968   : > { %v2366_v5 = vmul.f32 0.044715, %v4247_v16  ;;  %v4251_v17 = vadd.f32 %v2313_v13, %v4244_v63 }
 0x969   : > { %v2315_v18 = vpop.f32.mrf.mxu1 }
 0x96a   : > { %v2382_v4 = vmul.f32 %v2366_v5, %v4247_v16  ;;  %v2367_v46 = vmul.f32 0.044715, %v4251_v17  ;;  %v2316_v22 = vadd.f32 %v2315_v18, %v4241_v11 }
 0x96b   : > { %v2317_v14 = vpop.f32.mrf.mxu1 }
 0x96c   : > { %v2398_v23 = vmul.f32 %v2382_v4, %v4247_v16  ;;  %v2383_v40 = vmul.f32 %v2367_v46, %v4251_v17  ;;  %v2368_v24 = vmul.f32 0.044715, %v2316_v22  ;;  %v2318_v25 = vadd.f32 %v2317_v14, %v4244_v63 }
 0x96d   : > { %v2321_v26 = vpop.f32.mrf.mxu1 }
 0x96e   : > { %v2414_v29 = vadd.f32 %v2398_v23, %v4247_v16  ;;  %v2399_v31 = vmul.f32 %v2383_v40, %v4251_v17  ;;  %v2384_v32 = vmul.f32 %v2368_v24, %v2316_v22  ;;  %v4262_v6 = vadd.f32 %v2321_v26, %v4241_v11 }
 0x96f   : > { %v2369_v34 = vmul.f32 0.044715, %v2318_v25  ;;  %v2323_v35 = vpop.f32.mrf.mxu1  ;;  %v2352_v26 = vmul.f32 0.5, %v2316_v22 }
 0x970   : > { %v2430_v36 = vmul.f32 0.7978846, %v2414_v29  ;;  %v2400_v37 = vmul.f32 %v2384_v32, %v2316_v22  ;;  %v2370_v38 = vmul.f32 0.044715, %v4262_v6  ;;  %v4266_v59 = vadd.f32 %v2323_v35, %v4244_v63 }
 0x971   : > { %v2385_v9 = vmul.f32 %v2369_v34, %v2318_v25  ;;  %v2325_v49 = vpop.f32.mrf.mxu1  ;;  %v2415_v39 = vadd.f32 %v2399_v31, %v4251_v17  ;;  %v2351_v31 = vmul.f32 0.5, %v4251_v17  ;;  %v2353_v32 = vmul.f32 0.5, %v2318_v25 }
 0x972   : > { %v2416_v45 = vadd.f32 %v2400_v37, %v2316_v22  ;;  %v2386_v27 = vmul.f32 %v2370_v38, %v4262_v6  ;;  %v2371_v20 = vmul.f32 0.044715, %v4266_v59  ;;  %3556 = vtanh.f32 %v2430_v36 }
 0x973   : > { %v2401_v33 = vmul.f32 %v2385_v9, %v2318_v25  ;;  %v2326_v43 = vadd.f32 %v2325_v49, %v4241_v11  ;;  %v2327_v52 = vpop.f32.mrf.mxu1  ;;  %v2431_v28 = vmul.f32 0.7978846, %v2415_v39  ;;  %v2350_v35 = vmul.f32 0.5, %v4247_v16 }
 0x974   : > { %v2432_v44 = vmul.f32 0.7978846, %v2416_v45  ;;  %v2402_v10 = vmul.f32 %v2386_v27, %v4262_v6  ;;  %v2387_v51 = vmul.f32 %v2371_v20, %v4266_v59  ;;  %v2328_v53 = vadd.f32 %v2327_v52, %v4244_v63 }
 0x975   : > { %v2372_v54 = vmul.f32 0.044715, %v2326_v43  ;;  %v2417_v55 = vadd.f32 %v2401_v33, %v2318_v25  ;;  %3558 = vtanh.f32 %v2431_v28  ;;  %v2355_v22 = vmul.f32 0.5, %v4266_v59 }
 0x976   : > { %3560 = vtanh.f32 %v2432_v44  ;;  %v2403_v56 = vmul.f32 %v2387_v51, %v4266_v59  ;;  %v2373_v58 = vmul.f32 0.044715, %v2328_v53  ;;  %v2418_v0 = vadd.f32 %v2402_v10, %v4262_v6 }
 0x977   : > { %v2388_v61 = vmul.f32 %v2372_v54, %v2326_v43  ;;  %v2433_v62 = vmul.f32 0.7978846, %v2417_v55  ;;  %v2357_v17 = vmul.f32 0.5, %v2328_v53  ;;  %v2356_v44 = vmul.f32 0.5, %v2326_v43 }
 0x978   : > { %v2389_v1 = vmul.f32 %v2373_v58, %v2328_v53  ;;  %v2419_v2 = vadd.f32 %v2403_v56, %v4266_v59  ;;  %v2434_v12 = vmul.f32 0.7978846, %v2418_v0  ;;  %v2354_v54 = vmul.f32 0.5, %v4262_v6 }
 0x979   : > { %v2404_v3 = vmul.f32 %v2388_v61, %v2326_v43  ;;  %3562 = vtanh.f32 %v2433_v62 }
 0x97a   : > { %v2405_v60 = vmul.f32 %v2389_v1, %v2328_v53  ;;  %v2435_v7 = vmul.f32 0.7978846, %v2419_v2 }
 0x97b   : > { %v2420_v15 = vadd.f32 %v2404_v3, %v2326_v43 }
 0x97c   : > { %v2421_v13 = vadd.f32 %v2405_v60, %v2328_v53  ;;  %3564 = vtanh.f32 %v2435_v7 }
 0x97d   : > { %v2436_v5 = vmul.f32 0.7978846, %v2420_v15  ;;  %3566 = vtanh.f32 %v2434_v12 }
 0x97e   : > { %v2437_v18 = vmul.f32 0.7978846, %v2421_v13 }
 0x97f   : > { %3568 = vtanh.f32 %v2436_v5  ;;  %v3557_v4 = vpop.eup %3556 }
 0x980   : > { %3570 = vtanh.f32 %v2437_v18  ;;  %v2462_v29 = vadd.f32 1.0, %v3557_v4 }
 0x982   : > { %v3559_v46 = vpop.eup %3558  ;;  %v2478_v49 = vmul.f32 %v2462_v29, %v2350_v35 }
 0x983   : > { %v3561_v14 = vpop.eup %3560  ;;  %v2463_v40 = vadd.f32 1.0, %v3559_v46 }
 0x984   : > { %v2464_v23 = vadd.f32 1.0, %v3561_v14 }
 0x985   : > { %v2479_v38 = vmul.f32 %v2463_v40, %v2351_v31 }
 0x986   : > { %v3563_v24 = vpop.eup %3562  ;;  %v2480_v36 = vmul.f32 %v2464_v23, %v2352_v26 }
 0x987   : > { %v2465_v34 = vadd.f32 1.0, %v3563_v24 }
 0x988   : > { %v2494_v20 = vpack.c.bf16 %v2480_v36, %v2478_v49 }
 0x989   : > { %v3565_v37 = vpop.eup %3564  ;;  %v2481_v9 = vmul.f32 %v2465_v34, %v2353_v32 }
 0x98a   : > { %v3567_v39 = vpop.eup %3566  ;;  %v2467_v33 = vadd.f32 1.0, %v3565_v37 }
 0x98b   : > { %v2495_v45 = vpack.c.bf16 %v2481_v9, %v2479_v38  ;;  %v2466_v16 = vadd.f32 1.0, %v3567_v39 }
 0x98c   : > { %v3569_v27 = vpop.eup %3568  ;;  %v2483_v10 = vmul.f32 %v2467_v33, %v2355_v22 }
 0x98d   : > { %v3571_v52 = vpop.eup %3570  ;;  %2666 = vmatprep.mubr.bf16.mxu0 %v2495_v45  ;;  %v2468_v28 = vadd.f32 1.0, %v3569_v27  ;;  %v2482_v58 = vmul.f32 %v2466_v16, %v2354_v54 }
 0x98e   : > { %2667 = vmatmul.mubr.bf16.vlgmr.msra.gmra.mxu0 %v2494_v20  ;;  %v2469_v25 = vadd.f32 1.0, %v3571_v52 }
 0x98f   : > { %v2484_v55 = vmul.f32 %v2468_v28, %v2356_v44 }
 0x990   : > { %v2485_v51 = vmul.f32 %v2469_v25, %v2357_v17 }
 0x991   : > { %v2496_v61 = vpack.c.bf16 %v2484_v55, %v2482_v58 }
 0x992   : > { %v2497_v56 = vpack.c.bf16 %v2485_v51, %v2483_v10 }
 0x994   : > { %2674 = vmatprep.mubr.bf16.mxu0 %v2497_v56 }
 0x996   : > { %2675 = vmatmul.mubr.bf16.gmra.mxu0 %v2496_v61 }
 0x9a1   : > { %v2331_v62 = vpop.f32.mrf.mxu1 }
 0x9a2   : > { %v4283_v0 = vadd.f32 %v2331_v62, %v4241_v11 }
 0x9a3   : > { %v2333_v59 = vpop.f32.mrf.mxu1 }
 0x9a4   : > { %v2374_v53 = vmul.f32 0.044715, %v4283_v0  ;;  %v4287_v43 = vadd.f32 %v2333_v59, %v4244_v63 }
 0x9a5   : > { %v2335_v1 = vpop.f32.mrf.mxu1 }
 0x9a6   : > { %v2390_v2 = vmul.f32 %v2374_v53, %v4283_v0  ;;  %v2375_v6 = vmul.f32 0.044715, %v4287_v43  ;;  %v2336_v3 = vadd.f32 %v2335_v1, %v4241_v11 }
 0x9a7   : > { %v2337_v60 = vpop.f32.mrf.mxu1 }
 0x9a8   : > { %v2406_v7 = vmul.f32 %v2390_v2, %v4283_v0  ;;  %v2391_v12 = vmul.f32 %v2375_v6, %v4287_v43  ;;  %v2376_v15 = vmul.f32 0.044715, %v2336_v3  ;;  %v2338_v13 = vadd.f32 %v2337_v60, %v4244_v63 }
 0x9a9   : > { %v2341_v5 = vpop.f32.mrf.mxu1 }
 0x9aa   : > { %v2422_v18 = vadd.f32 %v2406_v7, %v4283_v0  ;;  %v2407_v4 = vmul.f32 %v2391_v12, %v4287_v43  ;;  %v2392_v46 = vmul.f32 %v2376_v15, %v2336_v3  ;;  %v4298_v14 = vadd.f32 %v2341_v5, %v4241_v11 }
 0x9ab   : > { %v2377_v23 = vmul.f32 0.044715, %v2338_v13  ;;  %v2343_v40 = vpop.f32.mrf.mxu1  ;;  %v2360_v12 = vmul.f32 0.5, %v2336_v3  ;;  %v2359_v5 = vmul.f32 0.5, %v4287_v43 }
 0x9ac   : > { %v2438_v24 = vmul.f32 0.7978846, %v2422_v18  ;;  %v2408_v26 = vmul.f32 %v2392_v46, %v2336_v3  ;;  %v2378_v29 = vmul.f32 0.044715, %v4298_v14  ;;  %v4302_v31 = vadd.f32 %v2343_v40, %v4244_v63 }
 0x9ad   : > { %v2393_v32 = vmul.f32 %v2377_v23, %v2338_v13  ;;  %v2345_v34 = vpop.f32.mrf.mxu1  ;;  %v2423_v35 = vadd.f32 %v2407_v4, %v4287_v43  ;;  %v2361_v18 = vmul.f32 0.5, %v2338_v13  ;;  %v2358_v46 = vmul.f32 0.5, %v4283_v0 }
 0x9ae   : > { %v2424_v36 = vadd.f32 %v2408_v26, %v2336_v3  ;;  %v2394_v37 = vmul.f32 %v2378_v29, %v4298_v14  ;;  %v2379_v38 = vmul.f32 0.044715, %v4302_v31  ;;  %3572 = vtanh.f32 %v2438_v24 }
 0x9af   : > { %v2409_v9 = vmul.f32 %v2393_v32, %v2338_v13  ;;  %v2346_v49 = vadd.f32 %v2345_v34, %v4241_v11  ;;  %v2347_v39 = vpop.f32.mrf.mxu1  ;;  %v2439_v45 = vmul.f32 0.7978846, %v2423_v35  ;;  %v2363_v3 = vmul.f32 0.5, %v4302_v31 }
 0x9b0   : > { %v2440_v27 = vmul.f32 0.7978846, %v2424_v36  ;;  %v2410_v20 = vmul.f32 %v2394_v37, %v4298_v14  ;;  %v2395_v33 = vmul.f32 %v2379_v38, %v4302_v31  ;;  %v2348_v52 = vadd.f32 %v2347_v39, %v4244_v63 }
 0x9b1   : > { %v2380_v22 = vmul.f32 0.044715, %v2346_v49  ;;  %v2425_v28 = vadd.f32 %v2409_v9, %v2338_v13  ;;  %3574 = vtanh.f32 %v2439_v45  ;;  %v2364_v39 = vmul.f32 0.5, %v2346_v49 }
 0x9b2   : > { %3576 = vtanh.f32 %v2440_v27  ;;  %v2411_v17 = vmul.f32 %v2395_v33, %v4302_v31  ;;  %v2381_v25 = vmul.f32 0.044715, %v2348_v52  ;;  %v2426_v11 = vadd.f32 %v2410_v20, %v4298_v14 }
 0x9b3   : > { %v2396_v44 = vmul.f32 %v2380_v22, %v2346_v49  ;;  %v2441_v16 = vmul.f32 0.7978846, %v2425_v28  ;;  %v2365_v43 = vmul.f32 0.5, %v2348_v52  ;;  %v2362_v20 = vmul.f32 0.5, %v4298_v14 }
 0x9b4   : > { %v2397_v10 = vmul.f32 %v2381_v25, %v2348_v52  ;;  %v2427_v51 = vadd.f32 %v2411_v17, %v4302_v31  ;;  %v2442_v58 = vmul.f32 0.7978846, %v2426_v11  ;;  %v2536_v25 = vsub.s32 3, %v3832_v47 }
 0x9b5   : > { %v2412_v54 = vmul.f32 %v2396_v44, %v2346_v49  ;;  %3578 = vtanh.f32 %v2441_v16 }
 0x9b6   : > { %v2413_v55 = vmul.f32 %v2397_v10, %v2348_v52  ;;  %v2443_v56 = vmul.f32 0.7978846, %v2427_v51  ;;  %v2537_v31 = vrot.slane %v4093_v30, %v2536_v25 }
 0x9b7   : > { %v2428_v63 = vadd.f32 %v2412_v54, %v2346_v49 }
 0x9b8   : > { %v2429_v61 = vadd.f32 %v2413_v55, %v2348_v52  ;;  %3580 = vtanh.f32 %v2443_v56 }
 0x9b9   : > { %v2444_v62 = vmul.f32 0.7978846, %v2428_v63  ;;  %3582 = vtanh.f32 %v2442_v58 }
 0x9ba   : > { %v2445_v59 = vmul.f32 0.7978846, %v2429_v61 }
 0x9bb   : > { %3584 = vtanh.f32 %v2444_v62  ;;  %v3573_v53 = vpop.eup %3572 }
 0x9bc   : > { %3586 = vtanh.f32 %v2445_v59  ;;  %v2470_v15 = vadd.f32 1.0, %v3573_v53 }
 0x9be   : > { %v3575_v1 = vpop.eup %3574  ;;  %v2486_v29 = vmul.f32 %v2470_v15, %v2358_v46 }
 0x9bf   : > { %v3577_v2 = vpop.eup %3576  ;;  %v2471_v60 = vadd.f32 1.0, %v3575_v1 }
 0x9c0   : > { %v2472_v6 = vadd.f32 1.0, %v3577_v2 }
 0x9c1   : > { %v2487_v24 = vmul.f32 %v2471_v60, %v2359_v5 }
 0x9c2   : > { %v3579_v7 = vpop.eup %3578  ;;  %v2488_v23 = vmul.f32 %v2472_v6, %v2360_v12 }
 0x9c3   : > { %v2473_v4 = vadd.f32 1.0, %v3579_v7 }
 0x9c4   : > { %v2498_v36 = vpack.c.bf16 %v2488_v23, %v2486_v29 }
 0x9c5   : > { %v3581_v40 = vpop.eup %3580  ;;  %v2489_v26 = vmul.f32 %v2473_v4, %v2361_v18 }
 0x9c6   : > { %v3583_v32 = vpop.eup %3582  ;;  %v2475_v37 = vadd.f32 1.0, %v3581_v40 }
 0x9c7   : > { %v2499_v34 = vpack.c.bf16 %v2489_v26, %v2487_v24  ;;  %v2474_v0 = vadd.f32 1.0, %v3583_v32 }
 0x9c8   : > { %v3585_v35 = vpop.eup %3584  ;;  %v2491_v45 = vmul.f32 %v2475_v37, %v2363_v3 }
 0x9c9   : > { %v3587_v38 = vpop.eup %3586  ;;  %2682 = vmatprep.mubr.bf16.mxu1 %v2499_v34  ;;  %v2476_v9 = vadd.f32 1.0, %v3585_v35  ;;  %v2490_v28 = vmul.f32 %v2474_v0, %v2362_v20 }
 0x9ca   : > { %2683 = vmatmul.mubr.bf16.vlgmr.msra.gmra.mxu1 %v2498_v36  ;;  %v2477_v13 = vadd.f32 1.0, %v3587_v38 }
 0x9cb   : > { %v2492_v33 = vmul.f32 %v2476_v9, %v2364_v39 }
 0x9cc   : > { %v2493_v27 = vmul.f32 %v2477_v13, %v2365_v43 }
 0x9cd   : > { %v2500_v17 = vpack.c.bf16 %v2492_v33, %v2490_v28 }
 0x9ce   : > { %v2501_v22 = vpack.c.bf16 %v2493_v27, %v2491_v45 }
 0x9d0   : > { %2690 = vmatprep.mubr.bf16.mxu1 %v2501_v22 }
 0x9d2   : > { %2691 = vmatmul.mubr.bf16.gmra.mxu1 %v2500_v17 }
 0xa4e   : > { %v3178_v44 = vpop.f32.mrf.mxu0 }
 0xa50   : > { %v3179_v16 = vpop.f32.mrf.mxu0 }
 0xa51   : > { %v3180_v52 = vadd.f32 %v3179_v16, %v3178_v44 }
 0xa52   : > { %v3181_v11 = vpop.f32.mrf.mxu0 }
 0xa53   : > { %v2669_v49 = vadd.f32 %v3180_v52, %v2537_v31 }
 0xa54   : > { %v3182_v10 = vpop.f32.mrf.mxu0 }
 0xa55   : > { %v3183_v51 = vadd.f32 %v3182_v10, %v3181_v11  ;;  %v2699_v54 = vadd.f32 %v2669_v49, %v4191_v57 }
 0xa56   : > { %v3184_v14 = vpop.f32.mrf.mxu0 }
 0xa57   : > { %v2672_v55 = vadd.f32 %v3183_v51, %v2537_v31  ;;  %2707 = vadd.xlane.f32.xlu0 %v2699_v54 }
 0xa58   : > { %v3185_v56 = vpop.f32.mrf.mxu0 }
 0xa59   : > { %v3186_v58 = vadd.f32 %v3185_v56, %v3184_v14  ;;  %v2700_v63 = vadd.f32 %v2672_v55, %v4193_v48 }
 0xa5a   : > { %v3187_v61 = vpop.f32.mrf.mxu0 }
 0xa5b   : > { %v2677_v62 = vadd.f32 %v3186_v58, %v2537_v31  ;;  %2709 = vadd.xlane.f32.xlu1 %v2700_v63 }
 0xa5c   : > { %v3188_v59 = vpop.f32.mrf.mxu0 }
 0xa5d   : > { %v3189_v30 = vadd.f32 %v3188_v59, %v3187_v61  ;;  %v2701_v53 = vadd.f32 %v2677_v62, %v4201_v21 }
 0xa5f   : > { %v2680_v1 = vadd.f32 %v3189_v30, %v2537_v31  ;;  %2711 = vadd.xlane.f32.xlu0 %v2701_v53 }
 0xa61   : > { %v2702_v2 = vadd.f32 %v2680_v1, %v4199_v19 }
 0xa63   : > { %2713 = vadd.xlane.f32.xlu1 %v2702_v2 }
 0xa8a   : > { %v3190_v57 = vpop.f32.mrf.mxu1 }
 0xa8c   : > { %v3191_v6 = vpop.f32.mrf.mxu1 }
 0xa8d   : > { %v3192_v60 = vadd.f32 %v3191_v6, %v3190_v57  ;;  %v2809_v6 = vsub.s32 7, %v3832_v47 }
 0xa8e   : > { %v3193_v7 = vpop.f32.mrf.mxu1 }
 0xa8f   : > { %v2685_v12 = vadd.f32 %v3192_v60, %v2537_v31 }
 0xa90   : > { %v3194_v15 = vpop.f32.mrf.mxu1 }
 0xa91   : > { %v3195_v5 = vadd.f32 %v3194_v15, %v3193_v7  ;;  %v2703_v48 = vadd.f32 %v2685_v12, %v4209_v41  ;;  %v3614_v7 = vld [vmem:[%s3724_s30] sm:$0xff] }
 0xa92   : > { %v3196_v18 = vpop.f32.mrf.mxu1 }
 0xa93   : > { %v2688_v4 = vadd.f32 %v3195_v5, %v2537_v31  ;;  %2715 = vadd.xlane.f32.xlu0 %v2703_v48  ;;  %v2810_v5 = vrot.slane %v3614_v7, %v2809_v6 }
 0xa94   : > { %v3197_v46 = vpop.f32.mrf.mxu1 }
 0xa95   : > { %v3198_v23 = vadd.f32 %v3197_v46, %v3196_v18  ;;  %v2704_v21 = vadd.f32 %v2688_v4, %v4211_v42 }
 0xa96   : > { %v3199_v40 = vpop.f32.mrf.mxu1 }
 0xa97   : > { %v2693_v24 = vadd.f32 %v3198_v23, %v2537_v31  ;;  %2717 = vadd.xlane.f32.xlu1 %v2704_v21 }
 0xa98   : > { %v3200_v19 = vpop.f32.mrf.mxu1 }
 0xa99   : > { %v3201_v26 = vadd.f32 %v3200_v19, %v3199_v40  ;;  %v2705_v29 = vadd.f32 %v2693_v24, %v4219_v8 }
 0xa9b   : > { %v2696_v32 = vadd.f32 %v3201_v26, %v2537_v31  ;;  %2719 = vadd.xlane.f32.xlu0 %v2705_v29 }
 0xa9d   : > { %v2706_v34 = vadd.f32 %v2696_v32, %v4217_v50 }
 0xa9f   : > { %2721 = vadd.xlane.f32.xlu1 %v2706_v34 }
 0xae0   : > { %v2708_v41 = vpop.xlane.xlu0 %2707 }
 0xae1   : > { %v2723_v35 = vmul.f32 0.0078125, %v2708_v41 }
 0xae3   : > { %v2731_v36 = vsub.f32 %v2699_v54, %v2723_v35 }
 0xae4   : > { %v2710_v37 = vpop.xlane.xlu1 %2709 }
 0xae5   : > { %v2724_v38 = vmul.f32 0.0078125, %v2710_v37  ;;  %v2739_v3 = vmul.f32 %v2731_v36, %v2731_v36 }
 0xae7   : > { %v2732_v9 = vsub.f32 %v2700_v63, %v2724_v38  ;;  %2747 = vadd.xlane.f32.xlu0 %v2739_v3 }
 0xae8   : > { %v2712_v42 = vpop.xlane.xlu0 %2711 }
 0xae9   : > { %v2725_v43 = vmul.f32 0.0078125, %v2712_v42  ;;  %v2740_v13 = vmul.f32 %v2732_v9, %v2732_v9 }
 0xaeb   : > { %v2733_v39 = vsub.f32 %v2701_v53, %v2725_v43  ;;  %2749 = vadd.xlane.f32.xlu1 %v2740_v13 }
 0xaec   : > { %v2714_v0 = vpop.xlane.xlu1 %2713 }
 0xaed   : > { %v2726_v8 = vmul.f32 0.0078125, %v2714_v0  ;;  %v2741_v45 = vmul.f32 %v2733_v39, %v2733_v39 }
 0xaef   : > { %v2734_v27 = vsub.f32 %v2702_v2, %v2726_v8  ;;  %2751 = vadd.xlane.f32.xlu0 %v2741_v45  ;;  %v2797_v2 = vsub.s32 6, %v3832_v47 }
 0xaf1   : > { %v2742_v50 = vmul.f32 %v2734_v27, %v2734_v27  ;;  %v2798_v12 = vrot.slane %v3614_v7, %v2797_v2 }
 0xaf3   : > { %2753 = vadd.xlane.f32.xlu1 %v2742_v50 }
 0xb1c   : > { %v2716_v20 = vpop.xlane.xlu0 %2715 }
 0xb1d   : > { %v2727_v33 = vmul.f32 0.0078125, %v2716_v20 }
 0xb1f   : > { %v4328_v22 = vsub.f32 %v2703_v48, %v2727_v33 }
 0xb20   : > { %v2718_v28 = vpop.xlane.xlu1 %2717 }
 0xb21   : > { %v2728_v17 = vmul.f32 0.0078125, %v2718_v28  ;;  %v2743_v25 = vmul.f32 %v4328_v22, %v4328_v22 }
 0xb23   : > { %v4332_v44 = vsub.f32 %v2704_v21, %v2728_v17  ;;  %2755 = vadd.xlane.f32.xlu0 %v2743_v25 }
 0xb24   : > { %v2720_v31 = vpop.xlane.xlu0 %2719 }
 0xb25   : > { %v2729_v16 = vmul.f32 0.0078125, %v2720_v31  ;;  %v2744_v52 = vmul.f32 %v4332_v44, %v4332_v44 }
 0xb27   : > { %v4336_v11 = vsub.f32 %v2705_v29, %v2729_v16  ;;  %2757 = vadd.xlane.f32.xlu1 %v2744_v52 }
 0xb28   : > { %v2722_v49 = vpop.xlane.xlu1 %2721 }
 0xb29   : > { %v2730_v10 = vmul.f32 0.0078125, %v2722_v49  ;;  %v2745_v51 = vmul.f32 %v4336_v11, %v4336_v11 }
 0xb2b   : > { %v4340_v54 = vsub.f32 %v2706_v34, %v2730_v10  ;;  %2759 = vadd.xlane.f32.xlu0 %v2745_v51 }
 0xb2d   : > { %v2746_v14 = vmul.f32 %v4340_v54, %v4340_v54 }
 0xb2f   : > { %2761 = vadd.xlane.f32.xlu1 %v2746_v14 }
 0xb70   : > { %v2748_v55 = vpop.xlane.xlu0 %2747 }
 0xb71   : > { %v2763_v56 = vmul.f32 0.0078125, %v2748_v55 }
 0xb73   : > { %v2771_v58 = vadd.f32 1e-12, %v2763_v56 }
 0xb74   : > { %v2750_v63 = vpop.xlane.xlu1 %2749 }
 0xb75   : > { %3588 = vrsqrt.f32 %v2771_v58  ;;  %v2764_v61 = vmul.f32 0.0078125, %v2750_v63 }
 0xb77   : > { %v2772_v62 = vadd.f32 1e-12, %v2764_v61 }
 0xb78   : > { %v2752_v59 = vpop.xlane.xlu0 %2751 }
 0xb79   : > { %3590 = vrsqrt.f32 %v2772_v62  ;;  %v2765_v30 = vmul.f32 0.0078125, %v2752_v59 }
 0xb7b   : > { %v2773_v53 = vadd.f32 1e-12, %v2765_v30 }
 0xb7c   : > { %v2754_v1 = vpop.xlane.xlu1 %2753 }
 0xb7d   : > { %3592 = vrsqrt.f32 %v2773_v53  ;;  %v2766_v57 = vmul.f32 0.0078125, %v2754_v1 }
 0xb7f   : > { %v2774_v60 = vadd.f32 1e-12, %v2766_v57 }
 0xb81   : > { %3594 = vrsqrt.f32 %v2774_v60 }
 0xb82   : > { %v3589_v15 = vpop.eup %3588 }
 0xb83   : > { %v2787_v48 = vmul.f32 %v3589_v15, %v2731_v36 }
 0xb85   : > { %v2799_v18 = vmul.f32 %v2798_v12, %v2787_v48 }
 0xb86   : > { %v3591_v4 = vpop.eup %3590 }
 0xb87   : > { %v2811_v46 = vadd.f32 %v2810_v5, %v2799_v18  ;;  %v2788_v23 = vmul.f32 %v3591_v4, %v2732_v9 }
 0xb89   : > { %2819 = vst [vmem:[%s4391_s7] sm:$0xff] %v2811_v46  ;;  %v2800_v21 = vmul.f32 %v2798_v12, %v2788_v23 }
 0xb8a   : > { %v3593_v40 = vpop.eup %3592 }
 0xb8b   : > { %v2812_v24 = vadd.f32 %v2810_v5, %v2800_v21  ;;  %v2789_v19 = vmul.f32 %v3593_v40, %v2733_v39 }
 0xb8d   : > { %2820 = vst [vmem:[%s4391_s7 + $0x8] sm:$0xff] %v2812_v24  ;;  %v2801_v47 = vmul.f32 %v2798_v12, %v2789_v19 }
 0xb8e   : > { %v3595_v26 = vpop.eup %3594 }
 0xb8f   : > { %v2813_v29 = vadd.f32 %v2810_v5, %v2801_v47  ;;  %v2790_v32 = vmul.f32 %v3595_v26, %v2734_v27 }
 0xb91   : > { %2821 = vst [vmem:[%s4391_s7 + $0x10] sm:$0xff] %v2813_v29  ;;  %v2802_v34 = vmul.f32 %v2798_v12, %v2790_v32 }
 0xb93   : > { %v2814_v41 = vadd.f32 %v2810_v5, %v2802_v34 }
 0xb95   : > { %2822 = vst [vmem:[%s4391_s7 + $0x18] sm:$0xff] %v2814_v41 }
 0xbac   : > { %v2756_v35 = vpop.xlane.xlu0 %2755 }
 0xbad   : > { %v2767_v36 = vmul.f32 0.0078125, %v2756_v35 }
 0xbaf   : > { %v2775_v37 = vadd.f32 1e-12, %v2767_v36 }
 0xbb0   : > { %v2758_v38 = vpop.xlane.xlu1 %2757 }
 0xbb1   : > { %3596 = vrsqrt.f32 %v2775_v37  ;;  %v2768_v3 = vmul.f32 0.0078125, %v2758_v38 }
 0xbb3   : > { %v2776_v9 = vadd.f32 1e-12, %v2768_v3 }
 0xbb4   : > { %v2760_v42 = vpop.xlane.xlu0 %2759 }
 0xbb5   : > { %3598 = vrsqrt.f32 %v2776_v9  ;;  %v2769_v43 = vmul.f32 0.0078125, %v2760_v42 }
 0xbb7   : > { %v2777_v13 = vadd.f32 1e-12, %v2769_v43 }
 0xbb8   : > { %v2762_v39 = vpop.xlane.xlu1 %2761 }
 0xbb9   : > { %3600 = vrsqrt.f32 %v2777_v13  ;;  %v2770_v0 = vmul.f32 0.0078125, %v2762_v39 }
 0xbbb   : > { %v2778_v8 = vadd.f32 1e-12, %v2770_v0 }
 0xbbd   : > { %3602 = vrsqrt.f32 %v2778_v8 }
 0xbbe   : > { %v3597_v45 = vpop.eup %3596 }
 0xbbf   : > { %v2791_v27 = vmul.f32 %v3597_v45, %v4328_v22 }
 0xbc1   : > { %v2803_v50 = vmul.f32 %v2798_v12, %v2791_v27 }
 0xbc2   : > { %v3599_v20 = vpop.eup %3598 }
 0xbc3   : > { %v2815_v33 = vadd.f32 %v2810_v5, %v2803_v50  ;;  %v2792_v28 = vmul.f32 %v3599_v20, %v4332_v44 }
 0xbc5   : > { %2823 = vst [vmem:[%s4391_s7 + $0x20] sm:$0xff] %v2815_v33  ;;  %v2804_v17 = vmul.f32 %v2798_v12, %v2792_v28 }
 0xbc6   : > { %v3601_v25 = vpop.eup %3600 }
 0xbc7   : > { %v2816_v31 = vadd.f32 %v2810_v5, %v2804_v17  ;;  %v2793_v16 = vmul.f32 %v3601_v25, %v4336_v11 }
 0xbc9   : > { %2824 = vst [vmem:[%s4391_s7 + $0x28] sm:$0xff] %v2816_v31  ;;  %v2805_v52 = vmul.f32 %v2798_v12, %v2793_v16 }
 0xbca   : > { %v3603_v22 = vpop.eup %3602 }
 0xbcb   : > { %v2817_v49 = vadd.f32 %v2810_v5, %v2805_v52  ;;  %v2794_v10 = vmul.f32 %v3603_v22, %v4340_v54 }
 0xbcd   : > { %2825 = vst [vmem:[%s4391_s7 + $0x30] sm:$0xff] %v2817_v49  ;;  %v2806_v44 = vmul.f32 %v2798_v12, %v2794_v10 }
 0xbcf   : > { %v2818_v51 = vadd.f32 %v2810_v5, %v2806_v44 }
 0xbd1   : > { %2826 = vst [vmem:[%s4391_s7 + $0x38] sm:$0xff] %v2818_v51 }
 0xbd2 PF: > { %s17_s26 = sadd.s32 1, %s3637_s26   ;;  %s4392_s24 = smov %s3633_s25 }
 0xbd3   : > { %p14_p6 = scmp.ge.s32.totalorder %s17_s26, 4   ;;  %s4393_s25 = smov %s4395_s27 }
 0xbd5   :  { %16 = sbr.rel (!%p14_p6) target bundleno = 2 (0x2), region = 100 }

</bundles_post_ra>
